<compile_context>
chip_gen: v5e
topology: v5e:2x2
jax: 0.10.0
libtpu: 0.0.40
codegen_flags: <defaults>
</compile_context>

<pallas_src>
import functools

import jax
import jax.numpy as jnp
from jax.experimental import pallas as pl
from jax.experimental.pallas import tpu as pltpu


_VMEM_LIMIT_BYTES = 32 * 1024 * 1024          # safe on v5e / v6e / v7x
_MASK_FILL = float(jnp.finfo(jnp.float32).min)  # torch masked_fill_ value


# --------------------------------------------------------------------------
# Kernel 1a: fused projection (shared input x for q, k, v).
# --------------------------------------------------------------------------
def _qkv_fused_projection_kernel(x_ref, w_ref, b_ref,
                                 qo_ref, ko_ref, vo_ref, *,
                                 embed_dim, q_scale):
    """One grid step: (tm, E) x (E, 3E) matmul, bias, split into Q/K/V."""
    acc = jnp.dot(x_ref[...].astype(jnp.bfloat16), w_ref[...],
                  preferred_element_type=jnp.float32) + b_ref[...]
    e = embed_dim
    qo_ref[...] = (acc[:, :e] * q_scale).astype(qo_ref.dtype)   # scale folded into Q
    ko_ref[...] = acc[:, e:2 * e].astype(ko_ref.dtype)
    vo_ref[...] = acc[:, 2 * e:].astype(vo_ref.dtype)


# --------------------------------------------------------------------------
# Kernel 1b: separate projections (distinct q, k, v inputs).
# --------------------------------------------------------------------------
def _qkv_separate_projection_kernel(q_ref, k_ref, v_ref,
                                    wq_ref, wk_ref, wv_ref,
                                    bq_ref, bk_ref, bv_ref,
                                    qo_ref, ko_ref, vo_ref, *, q_scale):
    qo_ref[...] = ((jnp.dot(q_ref[...].astype(jnp.bfloat16), wq_ref[...],
                            preferred_element_type=jnp.float32) + bq_ref[...])
                   * q_scale).astype(qo_ref.dtype)
    ko_ref[...] = (jnp.dot(k_ref[...].astype(jnp.bfloat16), wk_ref[...],
                           preferred_element_type=jnp.float32)
                   + bk_ref[...]).astype(ko_ref.dtype)
    vo_ref[...] = (jnp.dot(v_ref[...].astype(jnp.bfloat16), wv_ref[...],
                           preferred_element_type=jnp.float32)
                   + bv_ref[...]).astype(vo_ref.dtype)


# --------------------------------------------------------------------------
# Kernel 2: flash-style attention with online softmax (masked / unmasked).
# --------------------------------------------------------------------------
def _flash_body(q_ref, k_ref, v_ref, mask_ref, o_ref, m_sc, l_sc, acc_sc):
    """Grid = (batch, q-tile, kv-tile); kv is the reduction ('arbitrary') axis.

    q/k/v refs are bf16 (1/sqrt(d_k) already folded into Q); scores and the
    running max / denom / numerator are kept in f32.
    """
    ki = pl.program_id(2)

    @pl.when(ki == 0)
    def _():
        m_sc[...] = jnp.full_like(m_sc, -jnp.inf)
        l_sc[...] = jnp.zeros_like(l_sc)
        acc_sc[...] = jnp.zeros_like(acc_sc)

    # Scores via dim-1/dim-1 contraction (no K transpose); bf16 in, f32 acc.
    s = jnp.einsum("bqd,bkd->bqk", q_ref[...], k_ref[...],
                   preferred_element_type=jnp.float32)

    if mask_ref is not None:
        keep = mask_ref[...].astype(jnp.int32) > 0      # int8 stream -> i32
        s = jnp.where(keep, s, _MASK_FILL)               # matches masked_fill_

    m_prev = m_sc[...]
    m_new = jnp.maximum(m_prev, jnp.max(s, axis=-1, keepdims=True))
    alpha = jnp.exp(m_prev - m_new)
    p = jnp.exp(s - m_new)
    l_sc[...] = alpha * l_sc[...] + jnp.sum(p, axis=-1, keepdims=True)
    acc_sc[...] = alpha * acc_sc[...] + jnp.einsum(
        "bqk,bkd->bqd", p.astype(jnp.bfloat16), v_ref[...],
        preferred_element_type=jnp.float32)
    m_sc[...] = m_new

    @pl.when(ki == pl.num_programs(2) - 1)
    def _():
        o_ref[...] = (acc_sc[...] * pl.reciprocal(l_sc[...])).astype(o_ref.dtype)


def _flash_attention_masked(q_ref, k_ref, v_ref, mask_ref, o_ref,
                            m_sc, l_sc, acc_sc):
    _flash_body(q_ref, k_ref, v_ref, mask_ref, o_ref, m_sc, l_sc, acc_sc)


def _flash_attention_unmasked(q_ref, k_ref, v_ref, o_ref, m_sc, l_sc, acc_sc):
    _flash_body(q_ref, k_ref, v_ref, None, o_ref, m_sc, l_sc, acc_sc)


# --------------------------------------------------------------------------
# Helpers.
# --------------------------------------------------------------------------
def _round_up(x, m):
    return (x + m - 1) // m * m


def _pick_row_tile(rows):
    return next(t for t in (1024, 512, 256, 128) if rows % t == 0)


def _pick_seq_tiles(sp, batch):
    """tq grown preferentially; keep >= 4 parallel grid items when possible."""
    tk = 256 if sp % 256 == 0 else 128
    tq = 128
    for cand in (512, 256):
        if sp % cand == 0 and batch * (sp // cand) >= 4:
            tq = cand
            break
    return tq, tk


# --------------------------------------------------------------------------
# Wrapper.
# --------------------------------------------------------------------------
def self_attention(q, k, v, params, mask=None, shared_qkv=None):
    """Pallas self-attention.

    Args:
      q, k, v: (B, S, E) float32.
      params: dict with 'wq','wk','wv' of shape (E, E) (pre-transposed, x@W)
              and 'bq','bk','bv' of shape (E,).
      mask: optional bool/int array of shape (B, S), (B, 1, S) or (B, S, S);
            1 = keep, 0 = mask.
      shared_qkv: force the fused projection path (auto-detected via `is`
            when None; under jit pass explicitly since identity is lost).
    Returns:
      (B, S, E) float32.
    """
    B, S, E = q.shape
    inv_sqrt_d_k = float(E) ** -0.5
    if shared_qkv is None:
        shared_qkv = (q is k) and (k is v)

    # ---- 0) pad S up to a multiple of 128 (padded keys get masked) -------
    Sp = _round_up(S, 128)
    pad = Sp - S
    if pad:
        pad_cfg = ((0, 0), (0, pad), (0, 0))
        if shared_qkv:
            q = jnp.pad(q, pad_cfg)
            k = v = q
        else:
            q = jnp.pad(q, pad_cfg)
            k = jnp.pad(k, pad_cfg)
            v = jnp.pad(v, pad_cfg)

    # ---- mask normalization: int8 stream, no dense (B,S,S) build for key
    #      masks; padded key columns are always masked out. ----------------
    if mask is None:
        if pad:
            mask_i = jnp.pad(jnp.ones((B, S), jnp.int8),
                             ((0, 0), (0, pad))).reshape(B, 1, Sp)
        else:
            mask_i = None                      # mask-free kernel variant
    elif mask.ndim == 2:
        mask_i = jnp.pad(mask.astype(jnp.int8),
                         ((0, 0), (0, pad))).reshape(B, 1, Sp)
    elif mask.ndim == 3:
        mi = mask.astype(jnp.int8)
        if mi.shape[1] == 1:
            mask_i = jnp.pad(mi, ((0, 0), (0, 0), (0, pad)))
        else:
            mask_i = jnp.pad(mi, ((0, 0), (0, pad), (0, pad)))
    else:
        raise ValueError(f"Invalid mask shape {mask.shape}")

    # ---- 1) Q/K/V projections on flattened (B*Sp, E) rows ----------------
    rows = B * Sp
    tm = _pick_row_tile(rows)
    row_spec = pl.BlockSpec((tm, E), lambda i: (i, 0))

    if shared_qkv:
        xf = q.reshape(rows, E)
        wcat = jnp.concatenate(
            [params["wq"], params["wk"], params["wv"]],
            axis=1).astype(jnp.bfloat16)                        # (E, 3E) bf16
        bcat = jnp.concatenate(
            [params["bq"], params["bk"], params["bv"]]).reshape(1, 3 * E)
        kernel = functools.partial(_qkv_fused_projection_kernel,
                                   embed_dim=E, q_scale=inv_sqrt_d_k)
        qp, kp, vp = pl.pallas_call(
            kernel,
            out_shape=(jax.ShapeDtypeStruct((rows, E), jnp.bfloat16),) * 3,
            grid_spec=pltpu.PrefetchScalarGridSpec(
                num_scalar_prefetch=0,
                grid=(rows // tm,),
                in_specs=[row_spec,
                          pl.BlockSpec((E, 3 * E), lambda i: (0, 0)),
                          pl.BlockSpec((1, 3 * E), lambda i: (0, 0))],
                out_specs=(row_spec, row_spec, row_spec),
            ),
            compiler_params=pltpu.CompilerParams(
                dimension_semantics=("parallel",),
                vmem_limit_bytes=_VMEM_LIMIT_BYTES),
        )(xf, wcat, bcat)
    else:
        qf = q.reshape(rows, E)
        kf = k.reshape(rows, E)
        vf = v.reshape(rows, E)
        wq = params["wq"].astype(jnp.bfloat16)
        wk = params["wk"].astype(jnp.bfloat16)
        wv = params["wv"].astype(jnp.bfloat16)
        bq = params["bq"].reshape(1, E)
        bk = params["bk"].reshape(1, E)
        bv = params["bv"].reshape(1, E)
        w_spec = pl.BlockSpec((E, E), lambda i: (0, 0))
        b_spec = pl.BlockSpec((1, E), lambda i: (0, 0))
        kernel = functools.partial(_qkv_separate_projection_kernel,
                                   q_scale=inv_sqrt_d_k)
        qp, kp, vp = pl.pallas_call(
            kernel,
            out_shape=(jax.ShapeDtypeStruct((rows, E), jnp.bfloat16),) * 3,
            grid_spec=pltpu.PrefetchScalarGridSpec(
                num_scalar_prefetch=0,
                grid=(rows // tm,),
                in_specs=[row_spec, row_spec, row_spec,
                          w_spec, w_spec, w_spec,
                          b_spec, b_spec, b_spec],
                out_specs=(row_spec, row_spec, row_spec),
            ),
            compiler_params=pltpu.CompilerParams(
                dimension_semantics=("parallel",),
                vmem_limit_bytes=_VMEM_LIMIT_BYTES),
        )(qf, kf, vf, wq, wk, wv, bq, bk, bv)

    qp = qp.reshape(B, Sp, E)
    kp = kp.reshape(B, Sp, E)
    vp = vp.reshape(B, Sp, E)

    # ---- 2) flash-style attention ----------------------------------------
    tq, tk = _pick_seq_tiles(Sp, B)
    Bb = 1

    q_spec = pl.BlockSpec((Bb, tq, E), lambda b, qi, ki: (b, qi, 0))
    kv_spec = pl.BlockSpec((Bb, tk, E), lambda b, qi, ki: (b, ki, 0))
    out_spec = pl.BlockSpec((Bb, tq, E), lambda b, qi, ki: (b, qi, 0))

    if mask_i is None:
        attn_kernel = _flash_attention_unmasked
        in_specs = [q_spec, kv_spec, kv_spec]
        operands = (qp, kp, vp)
    else:
        if mask_i.shape[1] == 1:   # key-only mask row, broadcast over q
            mask_spec = pl.BlockSpec((Bb, 1, tk), lambda b, qi, ki: (b, 0, ki))
        else:                      # dense per-query mask, tiled over (q, kv)
            mask_spec = pl.BlockSpec((Bb, tq, tk),
                                     lambda b, qi, ki: (b, qi, ki))
        attn_kernel = _flash_attention_masked
        in_specs = [q_spec, kv_spec, kv_spec, mask_spec]
        operands = (qp, kp, vp, mask_i)

    out = pl.pallas_call(
        attn_kernel,
        out_shape=jax.ShapeDtypeStruct((B, Sp, E), jnp.float32),
        grid_spec=pltpu.PrefetchScalarGridSpec(
            num_scalar_prefetch=0,
            grid=(B // Bb, Sp // tq, Sp // tk),
            in_specs=in_specs,
            out_specs=out_spec,
            scratch_shapes=[
                pltpu.VMEM((Bb, tq, 1), jnp.float32),   # running max
                pltpu.VMEM((Bb, tq, 1), jnp.float32),   # running denom
                pltpu.VMEM((Bb, tq, E), jnp.float32),   # running numerator
            ],
        ),
        compiler_params=pltpu.CompilerParams(
            dimension_semantics=("parallel", "parallel", "arbitrary"),
            vmem_limit_bytes=_VMEM_LIMIT_BYTES),
    )(*operands)

    if pad:
        out = out[:, :S, :]
    return out


def init_params(key, embed_dim):
    """Xavier-normal weights (gain=1.0), zero biases; deterministic."""
    std = (2.0 / (embed_dim + embed_dim)) ** 0.5
    kq, kk, kv = jax.random.split(key, 3)
    # Stored pre-transposed: (in_features, out_features) so kernels do x @ W.
    return {
        "wq": jax.random.normal(kq, (embed_dim, embed_dim), jnp.float32) * std,
        "wk": jax.random.normal(kk, (embed_dim, embed_dim), jnp.float32) * std,
        "wv": jax.random.normal(kv, (embed_dim, embed_dim), jnp.float32) * std,
        "bq": jnp.zeros((embed_dim,), jnp.float32),
        "bk": jnp.zeros((embed_dim,), jnp.float32),
        "bv": jnp.zeros((embed_dim,), jnp.float32),
    }


def _reference(q, k, v, params, mask=None):
    """Pure-JAX f32 reference of the torch forward."""
    E = q.shape[-1]
    queries = q @ params["wq"] + params["bq"]
    keys = k @ params["wk"] + params["bk"]
    values = v @ params["wv"] + params["bv"]
    scores = jnp.einsum("bqd,bkd->bqk", queries, keys) * (E ** -0.5)
    if mask is not None:
        if mask.ndim == 2:
            mask = mask[:, None, :]
        scores = jnp.where(mask.astype(bool), scores,
                           jnp.finfo(scores.dtype).min)
    probs = jax.nn.softmax(scores, axis=-1)
    return probs @ values


if __name__ == "__main__":
    # Lane-dense shapes: E = 128 (full lanes), S = 256.
    B, S, E = 2, 256, 128
    key = jax.random.PRNGKey(0)
    kp_, kq_, kk_, kv_, km_, km2_ = jax.random.split(key, 6)

    params = init_params(kp_, E)
    q = jax.random.normal(kq_, (B, S, E), jnp.float32)
    k = jax.random.normal(kk_, (B, S, E), jnp.float32)
    v = jax.random.normal(kv_, (B, S, E), jnp.float32)

    # bf16 MXU operands + bf16 qp/kp/vp intermediates => re-validated tolerance.
    TOL = dict(atol=2e-2, rtol=2e-2)

    # (B, S) key mask with distinct q/k/v (separate-projection + masked flash).
    mask2d = (jax.random.uniform(km_, (B, S)) > 0.2).astype(jnp.int32)
    out = jax.block_until_ready(self_attention(q, k, v, params, mask2d))
    ref = _reference(q, k, v, params, mask2d)
    assert out.shape == (B, S, E)
    assert jnp.allclose(out, ref, **TOL), "mismatch (2D mask)"

    # No mask, shared q=k=v (fused (E,3E) projection + mask-free flash kernel).
    out_nm = jax.block_until_ready(self_attention(q, q, q, params, None))
    ref_nm = _reference(q, q, q, params, None)
    assert jnp.allclose(out_nm, ref_nm, **TOL), "mismatch (no mask, shared qkv)"

    # Dense (B, S, S) mask (tiled per (q, kv) block, int8 stream).
    mask3d = (jax.random.uniform(km2_, (B, S, S)) > 0.2).astype(jnp.int32)
    out_3d = jax.block_until_ready(self_attention(q, k, v, params, mask3d))
    ref_3d = _reference(q, k, v, params, mask3d)
    assert jnp.allclose(out_3d, ref_3d, **TOL), "mismatch (3D mask)"

    # Non-128-divisible S exercises the padding path (no giant single tile).
    Sr = 200
    qr, kr, vr, mr = q[:, :Sr], k[:, :Sr], v[:, :Sr], mask2d[:, :Sr]
    out_r = jax.block_until_ready(self_attention(qr, kr, vr, params, mr))
    ref_r = _reference(qr, kr, vr, params, mr)
    assert out_r.shape == (B, Sr, E)
    assert jnp.allclose(out_r, ref_r, **TOL), "mismatch (padded S)"

    print("KERNEL_OK")
</pallas_src>

<mosaic_0001>
module attributes {stable_mosaic.version = 11 : i64} {
  func.func @_qkv_separate_projection_kernel(%arg0: i32, %arg1: memref<512x128xf32, #tpu.memory_space<vmem>>, %arg2: memref<512x128xf32, #tpu.memory_space<vmem>>, %arg3: memref<512x128xf32, #tpu.memory_space<vmem>>, %arg4: memref<128x128xbf16, #tpu.memory_space<vmem>>, %arg5: memref<128x128xbf16, #tpu.memory_space<vmem>>, %arg6: memref<128x128xbf16, #tpu.memory_space<vmem>>, %arg7: memref<1x128xf32, #tpu.memory_space<vmem>>, %arg8: memref<1x128xf32, #tpu.memory_space<vmem>>, %arg9: memref<1x128xf32, #tpu.memory_space<vmem>>, %arg10: memref<512x128xbf16, #tpu.memory_space<vmem>>, %arg11: memref<512x128xbf16, #tpu.memory_space<vmem>>, %arg12: memref<512x128xbf16, #tpu.memory_space<vmem>>) attributes {dimension_semantics = [#tpu.dimension_semantics<parallel>], iteration_bounds = array<i64: 1>, scalar_prefetch = 0 : i64, scratch_operands = 0 : i64, tpu.core_type = #tpu.core_type<tc>, window_params = [{transform_indices = @transform_0, window_bounds = array<i64: 512, 128>}, {transform_indices = @transform_1, window_bounds = array<i64: 512, 128>}, {transform_indices = @transform_2, window_bounds = array<i64: 512, 128>}, {pipeline_mode = #tpu.pipeline_mode<synchronous>, transform_indices = @transform_3, window_bounds = array<i64: 128, 128>}, {pipeline_mode = #tpu.pipeline_mode<synchronous>, transform_indices = @transform_4, window_bounds = array<i64: 128, 128>}, {pipeline_mode = #tpu.pipeline_mode<synchronous>, transform_indices = @transform_5, window_bounds = array<i64: 128, 128>}, {pipeline_mode = #tpu.pipeline_mode<synchronous>, transform_indices = @transform_6, window_bounds = array<i64: 1, 128>}, {pipeline_mode = #tpu.pipeline_mode<synchronous>, transform_indices = @transform_7, window_bounds = array<i64: 1, 128>}, {pipeline_mode = #tpu.pipeline_mode<synchronous>, transform_indices = @transform_8, window_bounds = array<i64: 1, 128>}, {transform_indices = @transform_9, window_bounds = array<i64: 512, 128>}, {transform_indices = @transform_10, window_bounds = array<i64: 512, 128>}, {transform_indices = @transform_11, window_bounds = array<i64: 512, 128>}]} {
    %c0 = arith.constant 0 : index
    %c0_0 = arith.constant 0 : index
    %0 = vector.load %arg1[%c0, %c0_0] : memref<512x128xf32, #tpu.memory_space<vmem>>, vector<512x128xf32>
    %1 = arith.truncf %0 : vector<512x128xf32> to vector<512x128xbf16>
    %c0_1 = arith.constant 0 : index
    %c0_2 = arith.constant 0 : index
    %2 = vector.load %arg4[%c0_1, %c0_2] : memref<128x128xbf16, #tpu.memory_space<vmem>>, vector<128x128xbf16>
    %cst = arith.constant dense<0.000000e+00> : vector<512x128xf32>
    %3 = tpu.matmul %1, %2, %cst {dimension_numbers = #tpu.dot_dimension_numbers<[1], [0], [0], [1], [0, 0, 1, 1], [], []>} : vector<512x128xbf16>, vector<128x128xbf16>, vector<512x128xf32> -> vector<512x128xf32>
    %c0_3 = arith.constant 0 : index
    %c0_4 = arith.constant 0 : index
    %4 = vector.load %arg7[%c0_3, %c0_4] : memref<1x128xf32, #tpu.memory_space<vmem>>, vector<1x128xf32>
    %5 = vector.broadcast %4 : vector<1x128xf32> to vector<512x128xf32>
    %6 = arith.addf %3, %5 : vector<512x128xf32>
    %cst_5 = arith.constant 0.0883883461 : f32
    %7 = vector.broadcast %cst_5 : f32 to vector<512x128xf32>
    %8 = arith.mulf %6, %7 : vector<512x128xf32>
    %9 = arith.truncf %8 : vector<512x128xf32> to vector<512x128xbf16>
    %c0_6 = arith.constant 0 : index
    %c0_7 = arith.constant 0 : index
    %10 = vector.load %arg10[%c0_6, %c0_7] : memref<512x128xbf16, #tpu.memory_space<vmem>>, vector<512x128xbf16>
    tpu.vector_store %arg10[%c0_6, %c0_7], %9 {strides = array<i32>} : memref<512x128xbf16, #tpu.memory_space<vmem>>, vector<512x128xbf16>,
    %c0_8 = arith.constant 0 : index
    %c0_9 = arith.constant 0 : index
    %11 = vector.load %arg2[%c0_8, %c0_9] : memref<512x128xf32, #tpu.memory_space<vmem>>, vector<512x128xf32>
    %12 = arith.truncf %11 : vector<512x128xf32> to vector<512x128xbf16>
    %c0_10 = arith.constant 0 : index
    %c0_11 = arith.constant 0 : index
    %13 = vector.load %arg5[%c0_10, %c0_11] : memref<128x128xbf16, #tpu.memory_space<vmem>>, vector<128x128xbf16>
    %cst_12 = arith.constant dense<0.000000e+00> : vector<512x128xf32>
    %14 = tpu.matmul %12, %13, %cst_12 {dimension_numbers = #tpu.dot_dimension_numbers<[1], [0], [0], [1], [0, 0, 1, 1], [], []>} : vector<512x128xbf16>, vector<128x128xbf16>, vector<512x128xf32> -> vector<512x128xf32>
    %c0_13 = arith.constant 0 : index
    %c0_14 = arith.constant 0 : index
    %15 = vector.load %arg8[%c0_13, %c0_14] : memref<1x128xf32, #tpu.memory_space<vmem>>, vector<1x128xf32>
    %16 = vector.broadcast %15 : vector<1x128xf32> to vector<512x128xf32>
    %17 = arith.addf %14, %16 : vector<512x128xf32>
    %18 = arith.truncf %17 : vector<512x128xf32> to vector<512x128xbf16>
    %c0_15 = arith.constant 0 : index
    %c0_16 = arith.constant 0 : index
    %19 = vector.load %arg11[%c0_15, %c0_16] : memref<512x128xbf16, #tpu.memory_space<vmem>>, vector<512x128xbf16>
    tpu.vector_store %arg11[%c0_15, %c0_16], %18 {strides = array<i32>} : memref<512x128xbf16, #tpu.memory_space<vmem>>, vector<512x128xbf16>,
    %c0_17 = arith.constant 0 : index
    %c0_18 = arith.constant 0 : index
    %20 = vector.load %arg3[%c0_17, %c0_18] : memref<512x128xf32, #tpu.memory_space<vmem>>, vector<512x128xf32>
    %21 = arith.truncf %20 : vector<512x128xf32> to vector<512x128xbf16>
    %c0_19 = arith.constant 0 : index
    %c0_20 = arith.constant 0 : index
    %22 = vector.load %arg6[%c0_19, %c0_20] : memref<128x128xbf16, #tpu.memory_space<vmem>>, vector<128x128xbf16>
    %cst_21 = arith.constant dense<0.000000e+00> : vector<512x128xf32>
    %23 = tpu.matmul %21, %22, %cst_21 {dimension_numbers = #tpu.dot_dimension_numbers<[1], [0], [0], [1], [0, 0, 1, 1], [], []>} : vector<512x128xbf16>, vector<128x128xbf16>, vector<512x128xf32> -> vector<512x128xf32>
    %c0_22 = arith.constant 0 : index
    %c0_23 = arith.constant 0 : index
    %24 = vector.load %arg9[%c0_22, %c0_23] : memref<1x128xf32, #tpu.memory_space<vmem>>, vector<1x128xf32>
    %25 = vector.broadcast %24 : vector<1x128xf32> to vector<512x128xf32>
    %26 = arith.addf %23, %25 : vector<512x128xf32>
    %27 = arith.truncf %26 : vector<512x128xf32> to vector<512x128xbf16>
    %c0_24 = arith.constant 0 : index
    %c0_25 = arith.constant 0 : index
    %28 = vector.load %arg12[%c0_24, %c0_25] : memref<512x128xbf16, #tpu.memory_space<vmem>>, vector<512x128xbf16>
    tpu.vector_store %arg12[%c0_24, %c0_25], %27 {strides = array<i32>} : memref<512x128xbf16, #tpu.memory_space<vmem>>, vector<512x128xbf16>,
    return
  }
  func.func @transform_0(%arg0: i32) -> (i32, i32) {
    %c0_i32 = arith.constant 0 : i32
    %c0_i32_0 = arith.constant 0 : i32
    return %arg0, %c0_i32 : i32, i32
  }
  func.func @transform_1(%arg0: i32) -> (i32, i32) {
    %c0_i32 = arith.constant 0 : i32
    %c0_i32_0 = arith.constant 0 : i32
    return %arg0, %c0_i32 : i32, i32
  }
  func.func @transform_2(%arg0: i32) -> (i32, i32) {
    %c0_i32 = arith.constant 0 : i32
    %c0_i32_0 = arith.constant 0 : i32
    return %arg0, %c0_i32 : i32, i32
  }
  func.func @transform_3(%arg0: i32) -> (i32, i32) {
    %c0_i32 = arith.constant 0 : i32
    %c0_i32_0 = arith.constant 0 : i32
    %c0_i32_1 = arith.constant 0 : i32
    return %c0_i32, %c0_i32_0 : i32, i32
  }
  func.func @transform_4(%arg0: i32) -> (i32, i32) {
    %c0_i32 = arith.constant 0 : i32
    %c0_i32_0 = arith.constant 0 : i32
    %c0_i32_1 = arith.constant 0 : i32
    return %c0_i32, %c0_i32_0 : i32, i32
  }
  func.func @transform_5(%arg0: i32) -> (i32, i32) {
    %c0_i32 = arith.constant 0 : i32
    %c0_i32_0 = arith.constant 0 : i32
    %c0_i32_1 = arith.constant 0 : i32
    return %c0_i32, %c0_i32_0 : i32, i32
  }
  func.func @transform_6(%arg0: i32) -> (i32, i32) {
    %c0_i32 = arith.constant 0 : i32
    %c0_i32_0 = arith.constant 0 : i32
    %c0_i32_1 = arith.constant 0 : i32
    return %c0_i32, %c0_i32_0 : i32, i32
  }
  func.func @transform_7(%arg0: i32) -> (i32, i32) {
    %c0_i32 = arith.constant 0 : i32
    %c0_i32_0 = arith.constant 0 : i32
    %c0_i32_1 = arith.constant 0 : i32
    return %c0_i32, %c0_i32_0 : i32, i32
  }
  func.func @transform_8(%arg0: i32) -> (i32, i32) {
    %c0_i32 = arith.constant 0 : i32
    %c0_i32_0 = arith.constant 0 : i32
    %c0_i32_1 = arith.constant 0 : i32
    return %c0_i32, %c0_i32_0 : i32, i32
  }
  func.func @transform_9(%arg0: i32) -> (i32, i32) {
    %c0_i32 = arith.constant 0 : i32
    %c0_i32_0 = arith.constant 0 : i32
    return %arg0, %c0_i32 : i32, i32
  }
  func.func @transform_10(%arg0: i32) -> (i32, i32) {
    %c0_i32 = arith.constant 0 : i32
    %c0_i32_0 = arith.constant 0 : i32
    return %arg0, %c0_i32 : i32, i32
  }
  func.func @transform_11(%arg0: i32) -> (i32, i32) {
    %c0_i32 = arith.constant 0 : i32
    %c0_i32_0 = arith.constant 0 : i32
    return %arg0, %c0_i32 : i32, i32
  }
}

</mosaic_0001>

<bundles_post_ra>
// kernel: tpu_custom_call.1
= control target key start
LH: loop header
LB: loop body
LE: loop exit
PB: predicated region body
PF: predicated region fallthrough
CT: control target
= control target key end

     0   :  { %17 = vsyncpa [#allocation3], 0  ;;  %s2979_s0 = inlined_call_operand.hbm [shape: f32[512,128], index: 0, kind: input, shape index: {}]   ;;  %s2980_s1 = inlined_call_operand.hbm [shape: f32[512,128], index: 1, kind: input, shape index: {}]   ;;  %s2981_s2 = inlined_call_operand.hbm [shape: f32[512,128], index: 2, kind: input, shape index: {}]   ;;  %s2982_s3 = inlined_call_operand.hbm [shape: bf16[128,128], index: 3, kind: input, shape index: {}]   ;;  %s2983_s4 = inlined_call_operand.hbm [shape: bf16[128,128], index: 4, kind: input, shape index: {}]   ;;  %s2984_s5 = inlined_call_operand.hbm [shape: bf16[128,128], index: 5, kind: input, shape index: {}]   ;;  %s2985_s6 = inlined_call_operand.vmem [shape: f32[1,128], index: 6, kind: input, shape index: {}]   ;;  %s2986_s7 = inlined_call_operand.vmem [shape: f32[1,128], index: 7, kind: input, shape index: {}]   ;;  %s2987_s8 = inlined_call_operand.vmem [shape: f32[1,128], index: 8, kind: input, shape index: {}]   ;;  %s2988_s9 = inlined_call_operand.hbm [shape: bf16[512,128], index: 9, kind: output, shape index: {0}]   ;;  %s2989_s10 = inlined_call_operand.hbm [shape: bf16[512,128], index: 10, kind: output, shape index: {1}]   ;;  %s2990_s11 = inlined_call_operand.hbm [shape: bf16[512,128], index: 11, kind: output, shape index: {2}]  }
   0x1   :  { %18 = vsyncpa [#allocation6], 0 }
   0x2   :  { %19 = vsyncpa [#allocation9], 0 }
   0x3   :  { %20 = vsyncpa [#allocation12], 0 }
   0x4   :  { %21 = vsyncpa [#allocation4], 0 }
   0x5   :  { %22 = vsyncpa [#allocation15], 0  ;;  %s40_s19 = sshll.u32 %s2980_s1, 4  ;;  %s2599_s20 = smov [#allocation5]   ;;  %s41_s19 = int_to_ptr.hbm [resolvable:$true] %s40_s19 }
   0x6   :  { %s42_s21 = sshll.u32 %s2599_s20, 4  ;;  %s66_s24 = sshll.u32 %s2982_s3, 4  ;;  %s43_s21 = int_to_ptr.vmem [resolvable:$true] %s42_s21  ;;  %s67_s24 = int_to_ptr.hbm [resolvable:$true] %s66_s24 }
   0x7   :  { %s2600_s25 = smov 128   ;;  %s2601_s26 = smov 8  }
   0x8   :  { %48 = dma.hbm_to_vmem [thread:$0]  %s41_s19, 8192, %s43_s21, [#allocation6], %s2600_s25, %s2600_s25, %s2601_s26  }
   0x9   :  { %s2602_s27 = smov [#allocation8]   ;;  %s2603_s29 = smov 64  }
   0xa   :  { %s68_s28 = sshll.u32 %s2602_s27, 4  ;;  %s2604_s30 = smov 4   ;;  %s69_s28 = int_to_ptr.vmem [resolvable:$true] %s68_s28 }
   0xb   :  { %74 = dma.hbm_to_vmem [thread:$0]  %s67_s24, 1024, %s69_s28, [#allocation9], %s2603_s29, %s2603_s29, %s2604_s30  }
   0xc   :  { %s27_s13 = sshll.u32 %s2979_s0, 4  ;;  %s2605_s14 = smov [#allocation2]   ;;  %s28_s13 = int_to_ptr.hbm [resolvable:$true] %s27_s13 }
   0xd   :  { %s29_s3 = sshll.u32 %s2605_s14, 4  ;;  %s53_s17 = sshll.u32 %s2981_s2, 4  ;;  %s30_s3 = int_to_ptr.vmem [resolvable:$true] %s29_s3  ;;  %s54_s17 = int_to_ptr.hbm [resolvable:$true] %s53_s17 }
   0xe   :  { %35 = dma.hbm_to_vmem [thread:$0]  %s28_s13, 8192, %s30_s3, [#allocation3], %s2600_s25, %s2600_s25, %s2601_s26  }
   0xf   :  { %s2606_s18 = smov [#allocation7]   ;;  %s79_s22 = sshll.u32 %s2983_s4, 4  ;;  %s80_s22 = int_to_ptr.hbm [resolvable:$true] %s79_s22 }
  0x10   :  { %s55_s19 = sshll.u32 %s2606_s18, 4  ;;  %s92_s24 = sshll.u32 %s2984_s5, 4  ;;  %s56_s19 = int_to_ptr.vmem [resolvable:$true] %s55_s19  ;;  %s93_s24 = int_to_ptr.hbm [resolvable:$true] %s92_s24 }
  0x11   :  { %61 = dma.hbm_to_vmem [thread:$0]  %s54_s17, 8192, %s56_s19, [#allocation6], %s2600_s25, %s2600_s25, %s2601_s26  }
  0x12   :  { %s2607_s27 = smov [#allocation10]   ;;  %s2608_s2 = smov [#allocation11]  }
  0x13   :  { %s81_s28 = sshll.u32 %s2607_s27, 4  ;;  %s94_s1 = sshll.u32 %s2608_s2, 4  ;;  %s82_s28 = int_to_ptr.vmem [resolvable:$true] %s81_s28  ;;  %s95_s1 = int_to_ptr.vmem [resolvable:$true] %s94_s1 }
  0x14   :  { %87 = dma.hbm_to_vmem [thread:$0]  %s80_s22, 1024, %s82_s28, [#allocation9], %s2603_s29, %s2603_s29, %s2604_s30  }
  0x15   :  { %100 = dma.hbm_to_vmem [thread:$0]  %s93_s24, 1024, %s95_s1, [#allocation12], %s2603_s29, %s2603_s29, %s2604_s30  }
  0x16   :  { %2587 = dma.done.wait [#allocation3], 8192  }
  0x17   :  { %2588 = vsyncadd [#allocation3], 4294959104 }
  0x18   :  { %2589 = dma.done.wait [#allocation6], 16384  }
  0x19   :  { %2590 = vsyncadd [#allocation6], 4294950912 }
  0x1a   :  { %2591 = dma.done.wait [#allocation9], 2048  }
  0x1b   :  { %2592 = vsyncadd [#allocation9], 4294965248 }
  0x1c   :  { %2593 = dma.done.wait [#allocation12], 1024  }
  0x1d   :  { %2594 = vsyncadd [#allocation12], 4294966272  ;;  %v1738_v0 = vld [vmem:[#allocation8 + $0x38] sm:$0xff]  ;;  %v1737_v3 = vld [vmem:[#allocation8 + $0x30] sm:$0xff]  ;;  %s1597_s20 = sshll.u32 %s2989_s10, 4  ;;  %s2610_s21 = smov [#allocation13]   ;;  %s1598_s20 = int_to_ptr.hbm [resolvable:$true] %s1597_s20 }
  0x1e   :  { %v2699_v1 = vld [vmem:[#allocation10 + $0x38] sm:$0xff]  ;;  %295 = vmatpush.bf16.msra.mxu0 %v1738_v0  ;;  %2328 = vmatpush.bf16.msra.mxu3 %v1738_v0  ;;  %v2705_v4 = vld [vmem:[#allocation10 + $0x30] sm:$0xff]  ;;  %v1736_v6 = vld [vmem:[#allocation8 + $0x28] sm:$0xff]  ;;  %s1582_s22 = sshll.u32 %s2610_s21, 4  ;;  %s1584_s24 = sshll.u32 %s2988_s9, 4  ;;  %s1583_s22 = int_to_ptr.vmem [resolvable:$true] %s1582_s22  ;;  %s1585_s24 = int_to_ptr.hbm [resolvable:$true] %s1584_s24 }
  0x1f   :  { %v2701_v2 = vld [vmem:[#allocation11 + $0x38] sm:$0xff]  ;;  %820 = vmatpush.bf16.msra.mxu1 %v2699_v1  ;;  %v2707_v5 = vld [vmem:[#allocation11 + $0x30] sm:$0xff]  ;;  %v1744_v7 = vld [vmem:[#allocation10 + $0x28] sm:$0xff]  ;;  %s2611_s10 = smov [#allocation16]   ;;  %s1610_s1 = sshll.u32 %s2990_s11, 4  ;;  %s1611_s1 = int_to_ptr.hbm [resolvable:$true] %s1610_s1 }
  0x20   :  { %1281 = vmatpush.bf16.msra.mxu2 %v2701_v2  ;;  %v2711_v8 = vld [vmem:[#allocation11 + $0x28] sm:$0xff]  ;;  %v1735_v9 = vld [vmem:[#allocation8 + $0x20] sm:$0xff]  ;;  %v1734_v12 = vld [vmem:[#allocation8 + $0x18] sm:$0xff]  ;;  %s1608_s27 = sshll.u32 %s2611_s10, 4  ;;  %s1609_s27 = int_to_ptr.vmem [resolvable:$true] %s1608_s27 }
  0x21   :  { %v1743_v10 = vld [vmem:[#allocation10 + $0x20] sm:$0xff]  ;;  %v1742_v13 = vld [vmem:[#allocation10 + $0x18] sm:$0xff]  ;;  %v1733_v15 = vld [vmem:[#allocation8 + $0x10] sm:$0xff] }
  0x22   :  { %296 = vmatpush.bf16.msra.mxu0 %v1737_v3  ;;  %2329 = vmatpush.bf16.msra.mxu3 %v1737_v3  ;;  %v2714_v11 = vld [vmem:[#allocation11 + $0x20] sm:$0xff]  ;;  %v2717_v14 = vld [vmem:[#allocation11 + $0x18] sm:$0xff]  ;;  %v1741_v16 = vld [vmem:[#allocation10 + $0x10] sm:$0xff] }
  0x23   :  { %821 = vmatpush.bf16.msra.mxu1 %v2705_v4  ;;  %v2720_v17 = vld [vmem:[#allocation11 + $0x10] sm:$0xff]  ;;  %v1732_v18 = vld [vmem:[#allocation8 + $0x8] sm:$0xff]  ;;  %v1731_v21 = vld [vmem:[#allocation8] sm:$0xff] }
  0x24   :  { %1282 = vmatpush.bf16.msra.mxu2 %v2707_v5  ;;  %v1740_v19 = vld [vmem:[#allocation10 + $0x8] sm:$0xff]  ;;  %v1739_v22 = vld [vmem:[#allocation10] sm:$0xff]  ;;  %v133_v36 = vld [vmem:[#allocation2 + $0x10] sm:$0xff] }
  0x25   :  { %v2723_v20 = vld [vmem:[#allocation11 + $0x8] sm:$0xff]  ;;  %v2725_v23 = vld [vmem:[#allocation11] sm:$0xff]  ;;  %v134_v37 = vld [vmem:[#allocation2 + $0x18] sm:$0xff] }
  0x26   :  { %297 = vmatpush.bf16.msra.mxu0 %v1736_v6  ;;  %2330 = vmatpush.bf16.msra.mxu3 %v1736_v6  ;;  %v131_v24 = vld [vmem:[#allocation2] sm:$0xff]  ;;  %v132_v25 = vld [vmem:[#allocation2 + $0x8] sm:$0xff]  ;;  %v181_v38 = vld [vmem:[#allocation2 + $0x190] sm:$0xff]  ;;  %v196_v44 = vpack.c.bf16 %v134_v37, %v133_v36 }
  0x27   :  { %822 = vmatpush.bf16.msra.mxu1 %v1744_v7  ;;  %v179_v26 = vld [vmem:[#allocation2 + $0x180] sm:$0xff]  ;;  %v180_v27 = vld [vmem:[#allocation2 + $0x188] sm:$0xff]  ;;  %v195_v32 = vpack.c.bf16 %v132_v25, %v131_v24  ;;  %v182_v39 = vld [vmem:[#allocation2 + $0x198] sm:$0xff] }
  0x28   :  { %1283 = vmatpush.bf16.msra.mxu2 %v2711_v8  ;;  %v656_v28 = vld [vmem:[#allocation5] sm:$0xff]  ;;  %v657_v29 = vld [vmem:[#allocation5 + $0x8] sm:$0xff]  ;;  %v219_v33 = vpack.c.bf16 %v180_v27, %v179_v26  ;;  %v658_v40 = vld [vmem:[#allocation5 + $0x10] sm:$0xff]  ;;  %v220_v45 = vpack.c.bf16 %v182_v39, %v181_v38 }
  0x29   :  { %v1117_v30 = vld [vmem:[#allocation7] sm:$0xff]  ;;  %v1118_v31 = vld [vmem:[#allocation7 + $0x8] sm:$0xff]  ;;  %v720_v34 = vpack.c.bf16 %v657_v29, %v656_v28  ;;  %v659_v41 = vld [vmem:[#allocation5 + $0x18] sm:$0xff] }
  0x2a   :  { %298 = vmatpush.bf16.msra.mxu0 %v1735_v9  ;;  %2331 = vmatpush.bf16.msra.mxu3 %v1735_v9  ;;  %v1181_v35 = vpack.c.bf16 %v1118_v31, %v1117_v30  ;;  %v1119_v42 = vld [vmem:[#allocation7 + $0x10] sm:$0xff]  ;;  %v1120_v43 = vld [vmem:[#allocation7 + $0x18] sm:$0xff]  ;;  %v721_v46 = vpack.c.bf16 %v659_v41, %v658_v40  ;;  %v135_v48 = vld [vmem:[#allocation2 + $0x20] sm:$0xff] }
  0x2b   :  { %823 = vmatpush.bf16.msra.mxu1 %v1743_v10  ;;  %v1182_v47 = vpack.c.bf16 %v1120_v43, %v1119_v42  ;;  %v136_v49 = vld [vmem:[#allocation2 + $0x28] sm:$0xff]  ;;  %v183_v50 = vld [vmem:[#allocation2 + $0x1a0] sm:$0xff]  ;;  %v137_v60 = vld [vmem:[#allocation2 + $0x30] sm:$0xff] }
  0x2c   :  { %1284 = vmatpush.bf16.msra.mxu2 %v2714_v11  ;;  %v184_v51 = vld [vmem:[#allocation2 + $0x1a8] sm:$0xff]  ;;  %v660_v52 = vld [vmem:[#allocation5 + $0x20] sm:$0xff]  ;;  %v197_v56 = vpack.c.bf16 %v136_v49, %v135_v48  ;;  %v138_v61 = vld [vmem:[#allocation2 + $0x38] sm:$0xff] }
  0x2d   :  { %v661_v53 = vld [vmem:[#allocation5 + $0x28] sm:$0xff]  ;;  %v1121_v54 = vld [vmem:[#allocation7 + $0x20] sm:$0xff]  ;;  %v221_v57 = vpack.c.bf16 %v184_v51, %v183_v50  ;;  %v185_v62 = vld [vmem:[#allocation2 + $0x1b0] sm:$0xff] }
  0x2e   :  { %299 = vmatpush.bf16.msra.mxu0 %v1734_v12  ;;  %2332 = vmatpush.bf16.msra.mxu3 %v1734_v12  ;;  %v1122_v55 = vld [vmem:[#allocation7 + $0x28] sm:$0xff]  ;;  %v722_v58 = vpack.c.bf16 %v661_v53, %v660_v52  ;;  %v186_v63 = vld [vmem:[#allocation2 + $0x1b8] sm:$0xff]  ;;  %v662_v0 = vld [vmem:[#allocation5 + $0x30] sm:$0xff] }
  0x2f   :  { %824 = vmatpush.bf16.msra.mxu1 %v1742_v13  ;;  %v1183_v59 = vpack.c.bf16 %v1122_v55, %v1121_v54  ;;  %v1123_v3 = vld [vmem:[#allocation7 + $0x30] sm:$0xff]  ;;  %v222_v6 = vpack.c.bf16 %v186_v63, %v185_v62  ;;  %v188_v12 = vld [vmem:[#allocation2 + $0x1c8] sm:$0xff]  ;;  %v190_v24 = vld [vmem:[#allocation2 + $0x1d8] sm:$0xff] }
  0x30   :  { %1285 = vmatpush.bf16.msra.mxu2 %v2717_v14  ;;  %v666_v25 = vld [vmem:[#allocation5 + $0x50] sm:$0xff]  ;;  %v667_v26 = vld [vmem:[#allocation5 + $0x58] sm:$0xff]  ;;  %v668_v36 = vld [vmem:[#allocation5 + $0x60] sm:$0xff] }
  0x31   :  { %v1127_v27 = vld [vmem:[#allocation7 + $0x50] sm:$0xff]  ;;  %v1128_v28 = vld [vmem:[#allocation7 + $0x58] sm:$0xff]  ;;  %v725_v31 = vpack.c.bf16 %v667_v26, %v666_v25  ;;  %v669_v37 = vld [vmem:[#allocation5 + $0x68] sm:$0xff] }
  0x32   :  { %300 = vmatpush.bf16.msra.mxu0 %v1733_v15  ;;  %2333 = vmatpush.bf16.msra.mxu3 %v1733_v15  ;;  %v1125_v15 = vld [vmem:[#allocation7 + $0x40] sm:$0xff]  ;;  %v1130_v39 = vld [vmem:[#allocation7 + $0x68] sm:$0xff]  ;;  %v726_v42 = vpack.c.bf16 %v669_v37, %v668_v36  ;;  %v670_v48 = vld [vmem:[#allocation5 + $0x70] sm:$0xff] }
  0x33   :  { %825 = vmatpush.bf16.msra.mxu1 %v1741_v16  ;;  %v1129_v38 = vld [vmem:[#allocation7 + $0x60] sm:$0xff]  ;;  %v671_v49 = vld [vmem:[#allocation5 + $0x78] sm:$0xff]  ;;  %v1131_v50 = vld [vmem:[#allocation7 + $0x70] sm:$0xff] }
  0x34   :  { %1286 = vmatpush.bf16.msra.mxu2 %v2720_v17  ;;  %v1187_v43 = vpack.c.bf16 %v1130_v39, %v1129_v38  ;;  %v1132_v51 = vld [vmem:[#allocation7 + $0x78] sm:$0xff]  ;;  %v727_v54 = vpack.c.bf16 %v671_v49, %v670_v48  ;;  %v1133_v62 = vld [vmem:[#allocation7 + $0x80] sm:$0xff]  ;;  %v1134_v63 = vld [vmem:[#allocation7 + $0x88] sm:$0xff] }
  0x35   :  { %v1188_v55 = vpack.c.bf16 %v1132_v51, %v1131_v50  ;;  %v707_v25 = vld [vmem:[#allocation5 + $0x198] sm:$0xff] }
  0x36   :  { %301 = vmatpush.bf16.msra.mxu0 %v1732_v18  ;;  %2334 = vmatpush.bf16.msra.mxu3 %v1732_v18 }
  0x37   :  { %826 = vmatpush.bf16.msra.mxu1 %v1740_v19 }
  0x38   :  { %1287 = vmatpush.bf16.msra.mxu2 %v2723_v20 }
  0x3a   :  { %302 = vmatpush.bf16.msra.mxu0 %v1731_v21  ;;  %2335 = vmatpush.bf16.msra.mxu3 %v1731_v21 }
  0x3b   :  { %827 = vmatpush.bf16.msra.mxu1 %v1739_v22 }
  0x3c   :  { %1288 = vmatpush.bf16.msra.mxu2 %v2725_v23 }
  0x3d   :  { %303 = vmatmul.bf16.vlgmr.msra.gmra.mxu0 %v195_v32  ;;  %423 = vmatmul.bf16.vlgmr.msra.gmra.mxu3 %v219_v33  ;;  %v143_v32 = vld [vmem:[#allocation2 + $0x60] sm:$0xff]  ;;  %v144_v33 = vld [vmem:[#allocation2 + $0x68] sm:$0xff] }
  0x3e   :  { %2336 = vmatpush.bf16.msrb.mxu3 %v2699_v1  ;;  %828 = vmatmul.bf16.vlgmr.msra.gmra.mxu1 %v720_v34  ;;  %v663_v1 = vld [vmem:[#allocation5 + $0x38] sm:$0xff]  ;;  %v191_v34 = vld [vmem:[#allocation2 + $0x1e0] sm:$0xff]  ;;  %v201_v40 = vpack.c.bf16 %v144_v33, %v143_v32 }
  0x3f   :  { %1289 = vmatmul.bf16.vlgmr.msra.gmra.mxu2 %v1181_v35  ;;  %v192_v35 = vld [vmem:[#allocation2 + $0x1e8] sm:$0xff] }
  0x40   :  { %v225_v41 = vpack.c.bf16 %v192_v35, %v191_v34 }
  0x42   :  { %2337 = vmatpush.bf16.msrb.mxu3 %v2705_v4  ;;  %v1124_v4 = vld [vmem:[#allocation7 + $0x38] sm:$0xff] }
  0x43   :  { %v1184_v9 = vpack.c.bf16 %v1124_v4, %v1123_v3 }
  0x46   :  { %2338 = vmatpush.bf16.msrb.mxu3 %v1744_v7  ;;  %v723_v7 = vpack.c.bf16 %v663_v1, %v662_v0 }
  0x4a   :  { %2339 = vmatpush.bf16.msrb.mxu3 %v1743_v10  ;;  %v187_v10 = vld [vmem:[#allocation2 + $0x1c0] sm:$0xff] }
  0x4d   :  { %308 = vmatmul.bf16.gmra.mxu0 %v196_v44  ;;  %428 = vmatmul.bf16.gmra.mxu3 %v220_v45  ;;  %v145_v44 = vld [vmem:[#allocation2 + $0x70] sm:$0xff]  ;;  %v146_v45 = vld [vmem:[#allocation2 + $0x78] sm:$0xff] }
  0x4e   :  { %2340 = vmatpush.bf16.msrb.mxu3 %v1742_v13  ;;  %833 = vmatmul.bf16.gmra.mxu1 %v721_v46  ;;  %v664_v13 = vld [vmem:[#allocation5 + $0x40] sm:$0xff]  ;;  %v193_v46 = vld [vmem:[#allocation2 + $0x1f0] sm:$0xff]  ;;  %v202_v52 = vpack.c.bf16 %v146_v45, %v145_v44 }
  0x4f   :  { %1294 = vmatmul.bf16.gmra.mxu2 %v1182_v47  ;;  %v194_v47 = vld [vmem:[#allocation2 + $0x1f8] sm:$0xff] }
  0x50   :  { %v226_v53 = vpack.c.bf16 %v194_v47, %v193_v46 }
  0x52   :  { %2341 = vmatpush.bf16.msrb.mxu3 %v1741_v16  ;;  %v1126_v16 = vld [vmem:[#allocation7 + $0x48] sm:$0xff] }
  0x53   :  { %v1185_v21 = vpack.c.bf16 %v1126_v16, %v1125_v15  ;;  %v2755_v16 = vld [vmem:[%s2987_s8] ss:$0 sm:$0xff] }
  0x56   :  { %2342 = vmatpush.bf16.msrb.mxu3 %v1740_v19 }
  0x5a   :  { %2343 = vmatpush.bf16.msrb.mxu3 %v1739_v22  ;;  %v189_v22 = vld [vmem:[#allocation2 + $0x1d0] sm:$0xff] }
  0x5b   :  { %v224_v30 = vpack.c.bf16 %v190_v24, %v189_v22  ;;  %v674_v22 = vld [vmem:[#allocation5 + $0x90] sm:$0xff] }
  0x5c   :  { %v706_v24 = vld [vmem:[#allocation5 + $0x190] sm:$0xff] }
  0x5d   :  { %313 = vmatmul.bf16.gmra.mxu0 %v197_v56  ;;  %433 = vmatmul.bf16.gmra.mxu3 %v221_v57  ;;  %v147_v56 = vld [vmem:[#allocation2 + $0x80] sm:$0xff]  ;;  %v148_v57 = vld [vmem:[#allocation2 + $0x88] sm:$0xff]  ;;  %v745_v34 = vpack.c.bf16 %v707_v25, %v706_v24 }
  0x5e   :  { %2344 = vmatpush.bf16.msra.mxu3 %v2701_v2  ;;  %838 = vmatmul.bf16.gmra.mxu1 %v722_v58  ;;  %v198_v2 = vpack.c.bf16 %v138_v61, %v137_v60  ;;  %v672_v58 = vld [vmem:[#allocation5 + $0x80] sm:$0xff]  ;;  %v705_v60 = vld [vmem:[#allocation5 + $0x188] sm:$0xff]  ;;  %v203_v0 = vpack.c.bf16 %v148_v57, %v147_v56 }
  0x5f   :  { %1299 = vmatmul.bf16.gmra.mxu2 %v1183_v59  ;;  %v704_v59 = vld [vmem:[#allocation5 + $0x180] sm:$0xff]  ;;  %v673_v61 = vld [vmem:[#allocation5 + $0x88] sm:$0xff] }
  0x60   :  { %v744_v1 = vpack.c.bf16 %v705_v60, %v704_v59  ;;  %v728_v4 = vpack.c.bf16 %v673_v61, %v672_v58  ;;  %v152_v56 = vld [vmem:[#allocation2 + $0xa8] sm:$0xff]  ;;  %v676_v58 = vld [vmem:[#allocation5 + $0xa0] sm:$0xff] }
  0x61   :  { %v708_v59 = vld [vmem:[#allocation5 + $0x1a0] sm:$0xff]  ;;  %v709_v60 = vld [vmem:[#allocation5 + $0x1a8] sm:$0xff] }
  0x62   :  { %2345 = vmatpush.bf16.msra.mxu3 %v2707_v5  ;;  %v139_v5 = vld [vmem:[#allocation2 + $0x40] sm:$0xff] }
  0x66   :  { %2346 = vmatpush.bf16.msra.mxu3 %v2711_v8  ;;  %v140_v8 = vld [vmem:[#allocation2 + $0x48] sm:$0xff] }
  0x67   :  { %v199_v18 = vpack.c.bf16 %v140_v8, %v139_v5 }
  0x6a   :  { %2347 = vmatpush.bf16.msra.mxu3 %v2714_v11  ;;  %v665_v11 = vld [vmem:[#allocation5 + $0x48] sm:$0xff] }
  0x6b   :  { %v724_v19 = vpack.c.bf16 %v665_v11, %v664_v13 }
  0x6d   :  { %318 = vmatmul.bf16.gmra.mxu0 %v198_v2  ;;  %438 = vmatmul.bf16.gmra.mxu3 %v222_v6  ;;  %v1189_v2 = vpack.c.bf16 %v1134_v63, %v1133_v62  ;;  %v677_v63 = vld [vmem:[#allocation5 + $0xa8] sm:$0xff] }
  0x6e   :  { %2348 = vmatpush.bf16.msra.mxu3 %v2717_v14  ;;  %843 = vmatmul.bf16.gmra.mxu1 %v723_v7  ;;  %v223_v14 = vpack.c.bf16 %v188_v12, %v187_v10  ;;  %v2742_v7 = vld [vmem:[%s2985_s6] ss:$0 sm:$0xff] }
  0x6f   :  { %1304 = vmatmul.bf16.gmra.mxu2 %v1184_v9  ;;  %v2747_v9 = vld [vmem:[%s2986_s7] ss:$0 sm:$0xff] }
  0x72   :  { %2349 = vmatpush.bf16.msra.mxu3 %v2720_v17  ;;  %v141_v17 = vld [vmem:[#allocation2 + $0x50] sm:$0xff] }
  0x76   :  { %2350 = vmatpush.bf16.msra.mxu3 %v2723_v20  ;;  %v142_v20 = vld [vmem:[#allocation2 + $0x58] sm:$0xff] }
  0x77   :  { %v200_v29 = vpack.c.bf16 %v142_v20, %v141_v17  ;;  %v150_v17 = vld [vmem:[#allocation2 + $0x98] sm:$0xff] }
  0x7a   :  { %2351 = vmatpush.bf16.msra.mxu3 %v2725_v23  ;;  %v1186_v23 = vpack.c.bf16 %v1128_v28, %v1127_v27  ;;  %v675_v28 = vld [vmem:[#allocation5 + $0x98] sm:$0xff] }
  0x7b   :  { %v729_v38 = vpack.c.bf16 %v675_v28, %v674_v22 }
  0x7d   :  { %323 = vmatmul.bf16.gmra.mxu0 %v199_v18  ;;  %443 = vmatmul.bf16.gmra.mxu3 %v223_v14 }
  0x7e   :  { %848 = vmatmul.bf16.gmra.mxu1 %v724_v19 }
  0x7f   :  { %1309 = vmatmul.bf16.gmra.mxu2 %v1185_v21  ;;  %v149_v21 = vld [vmem:[#allocation2 + $0x90] sm:$0xff] }
  0x80   :  { %v204_v33 = vpack.c.bf16 %v150_v17, %v149_v21 }
  0x8d   :  { %328 = vmatmul.bf16.gmra.mxu0 %v200_v29  ;;  %448 = vmatmul.bf16.gmra.mxu3 %v224_v30  ;;  %v1135_v29 = vld [vmem:[#allocation7 + $0x90] sm:$0xff]  ;;  %v1136_v30 = vld [vmem:[#allocation7 + $0x98] sm:$0xff] }
  0x8e   :  { %853 = vmatmul.bf16.gmra.mxu1 %v725_v31  ;;  %v1190_v39 = vpack.c.bf16 %v1136_v30, %v1135_v29 }
  0x8f   :  { %1314 = vmatmul.bf16.gmra.mxu2 %v1186_v23 }
  0x9d   :  { %333 = vmatmul.bf16.gmra.mxu0 %v201_v40  ;;  %453 = vmatmul.bf16.gmra.mxu3 %v225_v41 }
  0x9e   :  { %858 = vmatmul.bf16.gmra.mxu1 %v726_v42 }
  0x9f   :  { %1319 = vmatmul.bf16.gmra.mxu2 %v1187_v43 }
  0xad   :  { %338 = vmatmul.bf16.gmra.mxu0 %v202_v52  ;;  %458 = vmatmul.bf16.gmra.mxu3 %v226_v53 }
  0xae   :  { %863 = vmatmul.bf16.gmra.mxu1 %v727_v54 }
  0xaf   :  { %1324 = vmatmul.bf16.gmra.mxu2 %v1188_v55  ;;  %v151_v55 = vld [vmem:[#allocation2 + $0xa0] sm:$0xff] }
  0xba   :  { %v304_v3 = vpop.f32.mrf.mxu0 }
  0xbb   :  { %v829_v6 = vpop.f32.mrf.mxu1  ;;  %v305_v8 = vadd.f32 %v2742_v7, %v304_v3 }
  0xbc   :  { %v830_v15 = vadd.f32 %v2747_v9, %v829_v6  ;;  %v205_v6 = vpack.c.bf16 %v152_v56, %v151_v55 }
  0xbd   :  { %343 = vmatmul.bf16.gmra.mxu0 %v203_v0  ;;  %948 = vmatmul.bf16.vlgmr.msrb.gmra.mxu3 %v744_v1  ;;  %v464_v14 = vmul.f32 0.088388346, %v305_v8  ;;  %v1137_v0 = vld [vmem:[#allocation7 + $0xa0] sm:$0xff]  ;;  %v1138_v1 = vld [vmem:[#allocation7 + $0xa8] sm:$0xff] }
  0xbe   :  { %868 = vmatmul.bf16.gmra.mxu1 %v728_v4 }
  0xbf   :  { %1329 = vmatmul.bf16.gmra.mxu2 %v1189_v2 }
  0xc0   :  { %v424_v5 = vpop.f32.mrf.mxu3 }
  0xc1   :  { %v425_v26 = vadd.f32 %v2742_v7, %v424_v5  ;;  %v746_v5 = vpack.c.bf16 %v709_v60, %v708_v59 }
  0xc2   :  { %v1290_v10 = vpop.f32.mrf.mxu2  ;;  %v306_v12 = vpop.f32.mrf.mxu0 }
  0xc3   :  { %v307_v13 = vadd.f32 %v2742_v7, %v306_v12  ;;  %v831_v11 = vpop.f32.mrf.mxu1  ;;  %v1291_v35 = vadd.f32 %v2755_v16, %v1290_v10  ;;  %v512_v40 = vmul.f32 0.088388346, %v425_v26 }
  0xc4   :  { %v832_v18 = vadd.f32 %v2747_v9, %v831_v11  ;;  %v1191_v11 = vpack.c.bf16 %v1138_v1, %v1137_v0 }
  0xc5   :  { %v465_v19 = vmul.f32 0.088388346, %v307_v13  ;;  %v730_v13 = vpack.c.bf16 %v677_v63, %v676_v58 }
  0xc6   :  { %v1918_v20 = vpack.c.bf16 %v832_v18, %v830_v15 }
  0xc7   :  { %v1758_v27 = vpack.c.bf16 %v465_v19, %v464_v14 }
  0xc8   :  { %1919 = vst [vmem:[#allocation14] sm:$0xff] %v1918_v20   ;;  %v426_v31 = vpop.f32.mrf.mxu3 }
  0xc9   :  { %1759 = vst [vmem:[#allocation13] sm:$0xff] %v1758_v27   ;;  %v427_v23 = vadd.f32 %v2742_v7, %v426_v31  ;;  %v153_v31 = vld [vmem:[#allocation2 + $0xb0] sm:$0xff] }
  0xca   :  { %v1292_v32 = vpop.f32.mrf.mxu2  ;;  %v309_v37 = vpop.f32.mrf.mxu0 }
  0xcb   :  { %v1293_v36 = vadd.f32 %v2755_v16, %v1292_v32  ;;  %v513_v41 = vmul.f32 0.088388346, %v427_v23  ;;  %v834_v42 = vpop.f32.mrf.mxu1  ;;  %v310_v46 = vadd.f32 %v2742_v7, %v309_v37  ;;  %v154_v23 = vld [vmem:[#allocation2 + $0xb8] sm:$0xff] }
  0xcc   :  { %v835_v51 = vadd.f32 %v2747_v9, %v834_v42 }
  0xcd   :  { %v2078_v43 = vpack.c.bf16 %v1293_v36, %v1291_v35  ;;  %v1878_v44 = vpack.c.bf16 %v513_v41, %v512_v40  ;;  %348 = vmatmul.bf16.gmra.mxu0 %v204_v33  ;;  %953 = vmatmul.bf16.gmra.mxu3 %v745_v34  ;;  %v466_v53 = vmul.f32 0.088388346, %v310_v46  ;;  %v678_v33 = vld [vmem:[#allocation5 + $0xb0] sm:$0xff]  ;;  %v711_v35 = vld [vmem:[#allocation5 + $0x1b8] sm:$0xff] }
  0xce   :  { %873 = vmatmul.bf16.gmra.mxu1 %v729_v38  ;;  %v710_v34 = vld [vmem:[#allocation5 + $0x1b0] sm:$0xff]  ;;  %v679_v38 = vld [vmem:[#allocation5 + $0xb8] sm:$0xff] }
  0xcf   :  { %2079 = vst [vmem:[#allocation16] sm:$0xff] %v2078_v43   ;;  %1334 = vmatmul.bf16.gmra.mxu2 %v1190_v39  ;;  %v1139_v39 = vld [vmem:[#allocation7 + $0xb0] sm:$0xff]  ;;  %v1140_v40 = vld [vmem:[#allocation7 + $0xb8] sm:$0xff] }
  0xd0   :  { %2258 = vst [vmem:[#allocation13 + $0xc0] sm:$0xff] %v1878_v44   ;;  %v429_v45 = vpop.f32.mrf.mxu3  ;;  %v206_v44 = vpack.c.bf16 %v154_v23, %v153_v31 }
  0xd1   :  { %v430_v61 = vadd.f32 %v2742_v7, %v429_v45  ;;  %v747_v45 = vpack.c.bf16 %v711_v35, %v710_v34 }
  0xd2   :  { %v1295_v47 = vpop.f32.mrf.mxu2  ;;  %v311_v48 = vpop.f32.mrf.mxu0 }
  0xd3   :  { %v312_v49 = vadd.f32 %v2742_v7, %v311_v48  ;;  %v836_v50 = vpop.f32.mrf.mxu1  ;;  %v1296_v8 = vadd.f32 %v2755_v16, %v1295_v47  ;;  %v514_v15 = vmul.f32 0.088388346, %v430_v61 }
  0xd4   :  { %v837_v52 = vadd.f32 %v2747_v9, %v836_v50  ;;  %v1192_v50 = vpack.c.bf16 %v1140_v40, %v1139_v39 }
  0xd5   :  { %v467_v54 = vmul.f32 0.088388346, %v312_v49  ;;  %v731_v49 = vpack.c.bf16 %v679_v38, %v678_v33 }
  0xd6   :  { %v1923_v57 = vpack.c.bf16 %v837_v52, %v835_v51 }
  0xd7   :  { %v1763_v62 = vpack.c.bf16 %v467_v54, %v466_v53 }
  0xd8   :  { %2266 = vst [vmem:[#allocation14 + $0x8] sm:$0xff] %v1923_v57   ;;  %v431_v3 = vpop.f32.mrf.mxu3 }
  0xd9   :  { %2235 = vst [vmem:[#allocation13 + $0x8] sm:$0xff] %v1763_v62   ;;  %v432_v4 = vadd.f32 %v2742_v7, %v431_v3  ;;  %v155_v3 = vld [vmem:[#allocation2 + $0xc0] sm:$0xff] }
  0xda   :  { %v1297_v2 = vpop.f32.mrf.mxu2  ;;  %v314_v12 = vpop.f32.mrf.mxu0 }
  0xdb   :  { %v1298_v10 = vadd.f32 %v2755_v16, %v1297_v2  ;;  %v515_v18 = vmul.f32 0.088388346, %v432_v4  ;;  %v839_v14 = vpop.f32.mrf.mxu1  ;;  %v315_v20 = vadd.f32 %v2742_v7, %v314_v12  ;;  %v156_v4 = vld [vmem:[#allocation2 + $0xc8] sm:$0xff] }
  0xdc   :  { %v840_v27 = vadd.f32 %v2747_v9, %v839_v14 }
  0xdd   :  { %v2083_v19 = vpack.c.bf16 %v1298_v10, %v1296_v8  ;;  %v1883_v21 = vpack.c.bf16 %v515_v18, %v514_v15  ;;  %353 = vmatmul.bf16.gmra.mxu0 %v205_v6  ;;  %958 = vmatmul.bf16.gmra.mxu3 %v746_v5  ;;  %v468_v29 = vmul.f32 0.088388346, %v315_v20  ;;  %v680_v6 = vld [vmem:[#allocation5 + $0xc0] sm:$0xff]  ;;  %v713_v8 = vld [vmem:[#allocation5 + $0x1c8] sm:$0xff] }
  0xde   :  { %878 = vmatmul.bf16.gmra.mxu1 %v730_v13  ;;  %v712_v5 = vld [vmem:[#allocation5 + $0x1c0] sm:$0xff]  ;;  %v681_v13 = vld [vmem:[#allocation5 + $0xc8] sm:$0xff] }
  0xdf   :  { %2297 = vst [vmem:[#allocation16 + $0x8] sm:$0xff] %v2083_v19   ;;  %1339 = vmatmul.bf16.gmra.mxu2 %v1191_v11  ;;  %v1141_v11 = vld [vmem:[#allocation7 + $0xc0] sm:$0xff]  ;;  %v1142_v15 = vld [vmem:[#allocation7 + $0xc8] sm:$0xff] }
  0xe0   :  { %2259 = vst [vmem:[#allocation13 + $0xc8] sm:$0xff] %v1883_v21   ;;  %v434_v17 = vpop.f32.mrf.mxu3  ;;  %v207_v21 = vpack.c.bf16 %v156_v4, %v155_v3 }
  0xe1   :  { %v435_v36 = vadd.f32 %v2742_v7, %v434_v17  ;;  %v748_v17 = vpack.c.bf16 %v713_v8, %v712_v5 }
  0xe2   :  { %v1300_v22 = vpop.f32.mrf.mxu2  ;;  %v316_v24 = vpop.f32.mrf.mxu0 }
  0xe3   :  { %v317_v25 = vadd.f32 %v2742_v7, %v316_v24  ;;  %v841_v26 = vpop.f32.mrf.mxu1  ;;  %v1301_v46 = vadd.f32 %v2755_v16, %v1300_v22  ;;  %v516_v51 = vmul.f32 0.088388346, %v435_v36 }
  0xe4   :  { %v842_v28 = vadd.f32 %v2747_v9, %v841_v26  ;;  %v1193_v26 = vpack.c.bf16 %v1142_v15, %v1141_v11 }
  0xe5   :  { %v469_v30 = vmul.f32 0.088388346, %v317_v25  ;;  %v732_v25 = vpack.c.bf16 %v681_v13, %v680_v6 }
  0xe6   :  { %v1928_v32 = vpack.c.bf16 %v842_v28, %v840_v27 }
  0xe7   :  { %v1768_v37 = vpack.c.bf16 %v469_v30, %v468_v29 }
  0xe8   :  { %2267 = vst [vmem:[#allocation14 + $0x10] sm:$0xff] %v1928_v32   ;;  %v436_v41 = vpop.f32.mrf.mxu3 }
  0xe9   :  { %2236 = vst [vmem:[#allocation13 + $0x10] sm:$0xff] %v1768_v37   ;;  %v437_v42 = vadd.f32 %v2742_v7, %v436_v41  ;;  %v157_v41 = vld [vmem:[#allocation2 + $0xd0] sm:$0xff] }
  0xea   :  { %v1302_v43 = vpop.f32.mrf.mxu2  ;;  %v319_v48 = vpop.f32.mrf.mxu0 }
  0xeb   :  { %v1303_v47 = vadd.f32 %v2755_v16, %v1302_v43  ;;  %v517_v52 = vmul.f32 0.088388346, %v437_v42  ;;  %v844_v53 = vpop.f32.mrf.mxu1  ;;  %v320_v57 = vadd.f32 %v2742_v7, %v319_v48  ;;  %v158_v42 = vld [vmem:[#allocation2 + $0xd8] sm:$0xff] }
  0xec   :  { %v845_v62 = vadd.f32 %v2747_v9, %v844_v53 }
  0xed   :  { %v2088_v54 = vpack.c.bf16 %v1303_v47, %v1301_v46  ;;  %v1888_v55 = vpack.c.bf16 %v517_v52, %v516_v51  ;;  %358 = vmatmul.bf16.gmra.mxu0 %v206_v44  ;;  %963 = vmatmul.bf16.gmra.mxu3 %v747_v45  ;;  %v470_v0 = vmul.f32 0.088388346, %v320_v57  ;;  %v682_v44 = vld [vmem:[#allocation5 + $0xd0] sm:$0xff]  ;;  %v715_v46 = vld [vmem:[#allocation5 + $0x1d8] sm:$0xff] }
  0xee   :  { %883 = vmatmul.bf16.gmra.mxu1 %v731_v49  ;;  %v714_v45 = vld [vmem:[#allocation5 + $0x1d0] sm:$0xff]  ;;  %v683_v49 = vld [vmem:[#allocation5 + $0xd8] sm:$0xff] }
  0xef   :  { %2298 = vst [vmem:[#allocation16 + $0x10] sm:$0xff] %v2088_v54   ;;  %1344 = vmatmul.bf16.gmra.mxu2 %v1192_v50  ;;  %v1143_v50 = vld [vmem:[#allocation7 + $0xd0] sm:$0xff]  ;;  %v1144_v51 = vld [vmem:[#allocation7 + $0xd8] sm:$0xff] }
  0xf0   :  { %2260 = vst [vmem:[#allocation13 + $0xd0] sm:$0xff] %v1888_v55   ;;  %v439_v56 = vpop.f32.mrf.mxu3  ;;  %v208_v55 = vpack.c.bf16 %v158_v42, %v157_v41 }
  0xf1   :  { %v440_v10 = vadd.f32 %v2742_v7, %v439_v56  ;;  %v749_v56 = vpack.c.bf16 %v715_v46, %v714_v45 }
  0xf2   :  { %v1305_v58 = vpop.f32.mrf.mxu2  ;;  %v321_v59 = vpop.f32.mrf.mxu0 }
  0xf3   :  { %v322_v60 = vadd.f32 %v2742_v7, %v321_v59  ;;  %v846_v61 = vpop.f32.mrf.mxu1  ;;  %v1306_v20 = vadd.f32 %v2755_v16, %v1305_v58  ;;  %v518_v27 = vmul.f32 0.088388346, %v440_v10 }
  0xf4   :  { %v847_v63 = vadd.f32 %v2747_v9, %v846_v61  ;;  %v1194_v61 = vpack.c.bf16 %v1144_v51, %v1143_v50 }
  0xf5   :  { %v471_v1 = vmul.f32 0.088388346, %v322_v60  ;;  %v733_v60 = vpack.c.bf16 %v683_v49, %v682_v44 }
  0xf6   :  { %v1933_v2 = vpack.c.bf16 %v847_v63, %v845_v62 }
  0xf7   :  { %v1773_v12 = vpack.c.bf16 %v471_v1, %v470_v0 }
  0xf8   :  { %2268 = vst [vmem:[#allocation14 + $0x18] sm:$0xff] %v1933_v2   ;;  %v441_v18 = vpop.f32.mrf.mxu3 }
  0xf9   :  { %2237 = vst [vmem:[#allocation13 + $0x18] sm:$0xff] %v1773_v12   ;;  %v442_v14 = vadd.f32 %v2742_v7, %v441_v18  ;;  %v159_v18 = vld [vmem:[#allocation2 + $0xe0] sm:$0xff] }
  0xfa   :  { %v1307_v19 = vpop.f32.mrf.mxu2  ;;  %v324_v24 = vpop.f32.mrf.mxu0 }
  0xfb   :  { %v1308_v22 = vadd.f32 %v2755_v16, %v1307_v19  ;;  %v519_v28 = vmul.f32 0.088388346, %v442_v14  ;;  %v849_v29 = vpop.f32.mrf.mxu1  ;;  %v325_v32 = vadd.f32 %v2742_v7, %v324_v24  ;;  %v160_v14 = vld [vmem:[#allocation2 + $0xe8] sm:$0xff] }
  0xfc   :  { %v850_v37 = vadd.f32 %v2747_v9, %v849_v29 }
  0xfd   :  { %v2093_v30 = vpack.c.bf16 %v1308_v22, %v1306_v20  ;;  %v1893_v31 = vpack.c.bf16 %v519_v28, %v518_v27  ;;  %363 = vmatmul.bf16.gmra.mxu0 %v207_v21  ;;  %968 = vmatmul.bf16.gmra.mxu3 %v748_v17  ;;  %v472_v39 = vmul.f32 0.088388346, %v325_v32  ;;  %v684_v21 = vld [vmem:[#allocation5 + $0xe0] sm:$0xff]  ;;  %v717_v20 = vld [vmem:[#allocation5 + $0x1e8] sm:$0xff] }
  0xfe   :  { %888 = vmatmul.bf16.gmra.mxu1 %v732_v25  ;;  %v716_v17 = vld [vmem:[#allocation5 + $0x1e0] sm:$0xff]  ;;  %v685_v25 = vld [vmem:[#allocation5 + $0xe8] sm:$0xff] }
  0xff   :  { %2299 = vst [vmem:[#allocation16 + $0x18] sm:$0xff] %v2093_v30   ;;  %1349 = vmatmul.bf16.gmra.mxu2 %v1193_v26  ;;  %v1145_v26 = vld [vmem:[#allocation7 + $0xe0] sm:$0xff]  ;;  %v1146_v27 = vld [vmem:[#allocation7 + $0xe8] sm:$0xff] }
 0x100   :  { %2261 = vst [vmem:[#allocation13 + $0xd8] sm:$0xff] %v1893_v31   ;;  %v444_v23 = vpop.f32.mrf.mxu3  ;;  %v209_v31 = vpack.c.bf16 %v160_v14, %v159_v18 }
 0x101   :  { %v445_v47 = vadd.f32 %v2742_v7, %v444_v23  ;;  %v750_v23 = vpack.c.bf16 %v717_v20, %v716_v17 }
 0x102   :  { %v1310_v33 = vpop.f32.mrf.mxu2  ;;  %v326_v34 = vpop.f32.mrf.mxu0 }
 0x103   :  { %v327_v35 = vadd.f32 %v2742_v7, %v326_v34  ;;  %v851_v36 = vpop.f32.mrf.mxu1  ;;  %v1311_v57 = vadd.f32 %v2755_v16, %v1310_v33  ;;  %v520_v62 = vmul.f32 0.088388346, %v445_v47 }
 0x104   :  { %v852_v38 = vadd.f32 %v2747_v9, %v851_v36  ;;  %v1195_v36 = vpack.c.bf16 %v1146_v27, %v1145_v26 }
 0x105   :  { %v473_v40 = vmul.f32 0.088388346, %v327_v35  ;;  %v734_v35 = vpack.c.bf16 %v685_v25, %v684_v21 }
 0x106   :  { %v1938_v43 = vpack.c.bf16 %v852_v38, %v850_v37 }
 0x107   :  { %v1778_v48 = vpack.c.bf16 %v473_v40, %v472_v39 }
 0x108   :  { %2269 = vst [vmem:[#allocation14 + $0x20] sm:$0xff] %v1938_v43   ;;  %v446_v52 = vpop.f32.mrf.mxu3 }
 0x109   :  { %2238 = vst [vmem:[#allocation13 + $0x20] sm:$0xff] %v1778_v48   ;;  %v447_v53 = vadd.f32 %v2742_v7, %v446_v52  ;;  %v161_v52 = vld [vmem:[#allocation2 + $0xf0] sm:$0xff] }
 0x10a   :  { %v1312_v54 = vpop.f32.mrf.mxu2  ;;  %v329_v59 = vpop.f32.mrf.mxu0 }
 0x10b   :  { %v1313_v58 = vadd.f32 %v2755_v16, %v1312_v54  ;;  %v521_v63 = vmul.f32 0.088388346, %v447_v53  ;;  %v854_v0 = vpop.f32.mrf.mxu1  ;;  %v330_v2 = vadd.f32 %v2742_v7, %v329_v59  ;;  %v162_v53 = vld [vmem:[#allocation2 + $0xf8] sm:$0xff] }
 0x10c   :  { %v855_v12 = vadd.f32 %v2747_v9, %v854_v0 }
 0x10d   :  { %v2098_v1 = vpack.c.bf16 %v1313_v58, %v1311_v57  ;;  %v1898_v3 = vpack.c.bf16 %v521_v63, %v520_v62  ;;  %368 = vmatmul.bf16.gmra.mxu0 %v208_v55  ;;  %973 = vmatmul.bf16.gmra.mxu3 %v749_v56  ;;  %v474_v11 = vmul.f32 0.088388346, %v330_v2  ;;  %v686_v55 = vld [vmem:[#allocation5 + $0xf0] sm:$0xff]  ;;  %v719_v57 = vld [vmem:[#allocation5 + $0x1f8] sm:$0xff] }
 0x10e   :  { %893 = vmatmul.bf16.gmra.mxu1 %v733_v60  ;;  %v718_v56 = vld [vmem:[#allocation5 + $0x1f0] sm:$0xff]  ;;  %v687_v60 = vld [vmem:[#allocation5 + $0xf8] sm:$0xff] }
 0x10f   :  { %2300 = vst [vmem:[#allocation16 + $0x20] sm:$0xff] %v2098_v1   ;;  %1354 = vmatmul.bf16.gmra.mxu2 %v1194_v61  ;;  %v1147_v61 = vld [vmem:[#allocation7 + $0xf0] sm:$0xff]  ;;  %v1148_v62 = vld [vmem:[#allocation7 + $0xf8] sm:$0xff] }
 0x110   :  { %2262 = vst [vmem:[#allocation13 + $0xe0] sm:$0xff] %v1898_v3   ;;  %v449_v4 = vpop.f32.mrf.mxu3  ;;  %v210_v3 = vpack.c.bf16 %v162_v53, %v161_v52 }
 0x111   :  { %v450_v22 = vadd.f32 %v2742_v7, %v449_v4  ;;  %v751_v4 = vpack.c.bf16 %v719_v57, %v718_v56 }
 0x112   :  { %v1315_v6 = vpop.f32.mrf.mxu2  ;;  %v331_v5 = vpop.f32.mrf.mxu0 }
 0x113   :  { %v332_v8 = vadd.f32 %v2742_v7, %v331_v5  ;;  %v856_v10 = vpop.f32.mrf.mxu1  ;;  %v1316_v32 = vadd.f32 %v2755_v16, %v1315_v6  ;;  %v522_v37 = vmul.f32 0.088388346, %v450_v22 }
 0x114   :  { %v857_v13 = vadd.f32 %v2747_v9, %v856_v10  ;;  %v1196_v10 = vpack.c.bf16 %v1148_v62, %v1147_v61 }
 0x115   :  { %v475_v15 = vmul.f32 0.088388346, %v332_v8  ;;  %v735_v8 = vpack.c.bf16 %v687_v60, %v686_v55 }
 0x116   :  { %v1943_v19 = vpack.c.bf16 %v857_v13, %v855_v12 }
 0x117   :  { %v1783_v24 = vpack.c.bf16 %v475_v15, %v474_v11 }
 0x118   :  { %2270 = vst [vmem:[#allocation14 + $0x28] sm:$0xff] %v1943_v19   ;;  %v451_v28 = vpop.f32.mrf.mxu3 }
 0x119   :  { %2239 = vst [vmem:[#allocation13 + $0x28] sm:$0xff] %v1783_v24   ;;  %v452_v29 = vadd.f32 %v2742_v7, %v451_v28  ;;  %v163_v28 = vld [vmem:[#allocation2 + $0x100] sm:$0xff] }
 0x11a   :  { %v1317_v30 = vpop.f32.mrf.mxu2  ;;  %v334_v34 = vpop.f32.mrf.mxu0 }
 0x11b   :  { %v1318_v33 = vadd.f32 %v2755_v16, %v1317_v30  ;;  %v523_v38 = vmul.f32 0.088388346, %v452_v29  ;;  %v859_v39 = vpop.f32.mrf.mxu1  ;;  %v335_v43 = vadd.f32 %v2742_v7, %v334_v34  ;;  %v164_v29 = vld [vmem:[#allocation2 + $0x108] sm:$0xff] }
 0x11c   :  { %v860_v48 = vadd.f32 %v2747_v9, %v859_v39 }
 0x11d   :  { %v2103_v40 = vpack.c.bf16 %v1318_v33, %v1316_v32  ;;  %v1903_v41 = vpack.c.bf16 %v523_v38, %v522_v37  ;;  %373 = vmatmul.bf16.gmra.mxu0 %v209_v31  ;;  %978 = vmatmul.bf16.gmra.mxu3 %v750_v23  ;;  %v476_v50 = vmul.f32 0.088388346, %v335_v43  ;;  %v688_v31 = vld [vmem:[#allocation5 + $0x100] sm:$0xff]  ;;  %v1166_v32 = vld [vmem:[#allocation7 + $0x188] sm:$0xff] }
 0x11e   :  { %898 = vmatmul.bf16.gmra.mxu1 %v734_v35  ;;  %v1165_v23 = vld [vmem:[#allocation7 + $0x180] sm:$0xff]  ;;  %v689_v35 = vld [vmem:[#allocation5 + $0x108] sm:$0xff] }
 0x11f   :  { %2301 = vst [vmem:[#allocation16 + $0x28] sm:$0xff] %v2103_v40   ;;  %1359 = vmatmul.bf16.gmra.mxu2 %v1195_v36  ;;  %v1149_v36 = vld [vmem:[#allocation7 + $0x100] sm:$0xff]  ;;  %v1150_v37 = vld [vmem:[#allocation7 + $0x108] sm:$0xff] }
 0x120   :  { %2263 = vst [vmem:[#allocation13 + $0xe8] sm:$0xff] %v1903_v41   ;;  %v454_v42 = vpop.f32.mrf.mxu3  ;;  %v211_v41 = vpack.c.bf16 %v164_v29, %v163_v28 }
 0x121   :  { %v455_v58 = vadd.f32 %v2742_v7, %v454_v42  ;;  %v1205_v42 = vpack.c.bf16 %v1166_v32, %v1165_v23 }
 0x122   :  { %v1320_v44 = vpop.f32.mrf.mxu2  ;;  %v336_v45 = vpop.f32.mrf.mxu0 }
 0x123   :  { %v337_v46 = vadd.f32 %v2742_v7, %v336_v45  ;;  %v861_v47 = vpop.f32.mrf.mxu1  ;;  %v1321_v2 = vadd.f32 %v2755_v16, %v1320_v44  ;;  %v524_v12 = vmul.f32 0.088388346, %v455_v58 }
 0x124   :  { %v862_v49 = vadd.f32 %v2747_v9, %v861_v47  ;;  %v1197_v47 = vpack.c.bf16 %v1150_v37, %v1149_v36  ;;  %v167_v36 = vld [vmem:[#allocation2 + $0x120] sm:$0xff]  ;;  %v168_v37 = vld [vmem:[#allocation2 + $0x128] sm:$0xff] }
 0x125   :  { %v477_v51 = vmul.f32 0.088388346, %v337_v46  ;;  %v736_v46 = vpack.c.bf16 %v689_v35, %v688_v31 }
 0x126   :  { %v1948_v54 = vpack.c.bf16 %v862_v49, %v860_v48 }
 0x127   :  { %v1788_v59 = vpack.c.bf16 %v477_v51, %v476_v50 }
 0x128   :  { %2271 = vst [vmem:[#allocation14 + $0x30] sm:$0xff] %v1948_v54   ;;  %v456_v63 = vpop.f32.mrf.mxu3 }
 0x129   :  { %2240 = vst [vmem:[#allocation13 + $0x30] sm:$0xff] %v1788_v59   ;;  %v457_v0 = vadd.f32 %v2742_v7, %v456_v63  ;;  %v165_v63 = vld [vmem:[#allocation2 + $0x110] sm:$0xff] }
 0x12a   :  { %v1322_v1 = vpop.f32.mrf.mxu2  ;;  %v339_v5 = vpop.f32.mrf.mxu0 }
 0x12b   :  { %v1323_v6 = vadd.f32 %v2755_v16, %v1322_v1  ;;  %v525_v13 = vmul.f32 0.088388346, %v457_v0  ;;  %v864_v11 = vpop.f32.mrf.mxu1  ;;  %v340_v19 = vadd.f32 %v2742_v7, %v339_v5  ;;  %v166_v0 = vld [vmem:[#allocation2 + $0x118] sm:$0xff] }
 0x12c   :  { %v865_v24 = vadd.f32 %v2747_v9, %v864_v11  ;;  %v691_v5 = vld [vmem:[#allocation5 + $0x118] sm:$0xff] }
 0x12d   :  { %v2108_v15 = vpack.c.bf16 %v1323_v6, %v1321_v2  ;;  %v1908_v18 = vpack.c.bf16 %v525_v13, %v524_v12  ;;  %378 = vmatmul.bf16.gmra.mxu0 %v210_v3  ;;  %983 = vmatmul.bf16.gmra.mxu3 %v751_v4  ;;  %v478_v26 = vmul.f32 0.088388346, %v340_v19  ;;  %v690_v3 = vld [vmem:[#allocation5 + $0x110] sm:$0xff]  ;;  %v1168_v2 = vld [vmem:[#allocation7 + $0x198] sm:$0xff] }
 0x12e   :  { %903 = vmatmul.bf16.gmra.mxu1 %v735_v8  ;;  %v1167_v4 = vld [vmem:[#allocation7 + $0x190] sm:$0xff] }
 0x12f   :  { %2302 = vst [vmem:[#allocation16 + $0x30] sm:$0xff] %v2108_v15   ;;  %1364 = vmatmul.bf16.gmra.mxu2 %v1196_v10  ;;  %v1151_v8 = vld [vmem:[#allocation7 + $0x110] sm:$0xff]  ;;  %v1152_v10 = vld [vmem:[#allocation7 + $0x118] sm:$0xff] }
 0x130   :  { %2264 = vst [vmem:[#allocation13 + $0xf0] sm:$0xff] %v1908_v18   ;;  %v459_v14 = vpop.f32.mrf.mxu3  ;;  %v212_v18 = vpack.c.bf16 %v166_v0, %v165_v63 }
 0x131   :  { %v460_v33 = vadd.f32 %v2742_v7, %v459_v14  ;;  %v1206_v14 = vpack.c.bf16 %v1168_v2, %v1167_v4 }
 0x132   :  { %v1325_v21 = vpop.f32.mrf.mxu2  ;;  %v341_v17 = vpop.f32.mrf.mxu0 }
 0x133   :  { %v342_v20 = vadd.f32 %v2742_v7, %v341_v17  ;;  %v866_v22 = vpop.f32.mrf.mxu1  ;;  %v1326_v43 = vadd.f32 %v2755_v16, %v1325_v21  ;;  %v526_v48 = vmul.f32 0.088388346, %v460_v33 }
 0x134   :  { %v867_v25 = vadd.f32 %v2747_v9, %v866_v22  ;;  %v1198_v22 = vpack.c.bf16 %v1152_v10, %v1151_v8  ;;  %v170_v8 = vld [vmem:[#allocation2 + $0x138] sm:$0xff] }
 0x135   :  { %v479_v27 = vmul.f32 0.088388346, %v342_v20  ;;  %v737_v20 = vpack.c.bf16 %v691_v5, %v690_v3  ;;  %v169_v5 = vld [vmem:[#allocation2 + $0x130] sm:$0xff] }
 0x136   :  { %v1953_v30 = vpack.c.bf16 %v867_v25, %v865_v24 }
 0x137   :  { %v1793_v34 = vpack.c.bf16 %v479_v27, %v478_v26 }
 0x138   :  { %2272 = vst [vmem:[#allocation14 + $0x38] sm:$0xff] %v1953_v30   ;;  %v461_v38 = vpop.f32.mrf.mxu3 }
 0x139   :  { %2241 = vst [vmem:[#allocation13 + $0x38] sm:$0xff] %v1793_v34   ;;  %v462_v39 = vadd.f32 %v2742_v7, %v461_v38 }
 0x13a   :  { %v1327_v40 = vpop.f32.mrf.mxu2  ;;  %v344_v45 = vpop.f32.mrf.mxu0 }
 0x13b   :  { %v1328_v44 = vadd.f32 %v2755_v16, %v1327_v40  ;;  %v527_v49 = vmul.f32 0.088388346, %v462_v39  ;;  %v869_v50 = vpop.f32.mrf.mxu1  ;;  %v345_v54 = vadd.f32 %v2742_v7, %v344_v45  ;;  %v692_v39 = vld [vmem:[#allocation5 + $0x120] sm:$0xff]  ;;  %v1154_v45 = vld [vmem:[#allocation7 + $0x128] sm:$0xff] }
 0x13c   :  { %v870_v59 = vadd.f32 %v2747_v9, %v869_v50  ;;  %v1169_v40 = vld [vmem:[#allocation7 + $0x1a0] sm:$0xff]  ;;  %v213_v50 = vpack.c.bf16 %v168_v37, %v167_v36 }
 0x13d   :  { %v2113_v51 = vpack.c.bf16 %v1328_v44, %v1326_v43  ;;  %v1913_v52 = vpack.c.bf16 %v527_v49, %v526_v48  ;;  %383 = vmatmul.bf16.gmra.mxu0 %v211_v41  ;;  %1409 = vmatmul.bf16.vlgmr.msra.gmra.mxu3 %v1205_v42  ;;  %v480_v61 = vmul.f32 0.088388346, %v345_v54  ;;  %v1170_v41 = vld [vmem:[#allocation7 + $0x1a8] sm:$0xff]  ;;  %v1153_v44 = vld [vmem:[#allocation7 + $0x120] sm:$0xff] }
 0x13e   :  { %908 = vmatmul.bf16.gmra.mxu1 %v736_v46  ;;  %v693_v43 = vld [vmem:[#allocation5 + $0x128] sm:$0xff] }
 0x13f   :  { %2303 = vst [vmem:[#allocation16 + $0x38] sm:$0xff] %v2113_v51   ;;  %1369 = vmatmul.bf16.gmra.mxu2 %v1197_v47  ;;  %v1207_v51 = vpack.c.bf16 %v1170_v41, %v1169_v40 }
 0x140   :  { %2265 = vst [vmem:[#allocation13 + $0xf8] sm:$0xff] %v1913_v52   ;;  %v949_v53 = vpop.f32.mrf.mxu3 }
 0x141   :  { %v950_v13 = vadd.f32 %v2747_v9, %v949_v53 }
 0x142   :  { %v1330_v55 = vpop.f32.mrf.mxu2  ;;  %v346_v56 = vpop.f32.mrf.mxu0 }
 0x143   :  { %v347_v57 = vadd.f32 %v2742_v7, %v346_v56  ;;  %v871_v58 = vpop.f32.mrf.mxu1  ;;  %v1331_v19 = vadd.f32 %v2755_v16, %v1330_v55  ;;  %v738_v55 = vpack.c.bf16 %v693_v43, %v692_v39  ;;  %v1199_v56 = vpack.c.bf16 %v1154_v45, %v1153_v44  ;;  %v171_v43 = vld [vmem:[#allocation2 + $0x140] sm:$0xff]  ;;  %v172_v44 = vld [vmem:[#allocation2 + $0x148] sm:$0xff] }
 0x144   :  { %v872_v60 = vadd.f32 %v2747_v9, %v871_v58 }
 0x145   :  { %v481_v62 = vmul.f32 0.088388346, %v347_v57 }
 0x146   :  { %v1958_v1 = vpack.c.bf16 %v872_v60, %v870_v59 }
 0x147   :  { %v1798_v6 = vpack.c.bf16 %v481_v62, %v480_v61 }
 0x148   :  { %2273 = vst [vmem:[#allocation14 + $0x40] sm:$0xff] %v1958_v1   ;;  %v951_v12 = vpop.f32.mrf.mxu3 }
 0x149   :  { %2242 = vst [vmem:[#allocation13 + $0x40] sm:$0xff] %v1798_v6   ;;  %v952_v11 = vadd.f32 %v2747_v9, %v951_v12  ;;  %v694_v12 = vld [vmem:[#allocation5 + $0x130] sm:$0xff] }
 0x14a   :  { %v1332_v15 = vpop.f32.mrf.mxu2  ;;  %v349_v17 = vpop.f32.mrf.mxu0 }
 0x14b   :  { %v1333_v21 = vadd.f32 %v2755_v16, %v1332_v15  ;;  %v2038_v24 = vpack.c.bf16 %v952_v11, %v950_v13  ;;  %v874_v25 = vpop.f32.mrf.mxu1  ;;  %v350_v28 = vadd.f32 %v2742_v7, %v349_v17  ;;  %v1171_v13 = vld [vmem:[#allocation7 + $0x1b0] sm:$0xff]  ;;  %v1172_v11 = vld [vmem:[#allocation7 + $0x1b8] sm:$0xff] }
 0x14c   :  { %v875_v32 = vadd.f32 %v2747_v9, %v874_v25  ;;  %v1208_v25 = vpack.c.bf16 %v1172_v11, %v1171_v13 }
 0x14d   :  { %v2118_v26 = vpack.c.bf16 %v1333_v21, %v1331_v19  ;;  %2289 = vst [vmem:[#allocation14 + $0xc0] sm:$0xff] %v2038_v24   ;;  %388 = vmatmul.bf16.gmra.mxu0 %v212_v18  ;;  %1414 = vmatmul.bf16.gmra.mxu3 %v1206_v14  ;;  %v482_v34 = vmul.f32 0.088388346, %v350_v28  ;;  %v695_v18 = vld [vmem:[#allocation5 + $0x138] sm:$0xff]  ;;  %v1155_v14 = vld [vmem:[#allocation7 + $0x130] sm:$0xff]  ;;  %v214_v24 = vpack.c.bf16 %v170_v8, %v169_v5 }
 0x14e   :  { %913 = vmatmul.bf16.gmra.mxu1 %v737_v20  ;;  %v1156_v19 = vld [vmem:[#allocation7 + $0x138] sm:$0xff]  ;;  %v2860_v8 = vld [vmem:[%s2986_s7] ss:$0 sm:$0xff] }
 0x14f   :  { %2304 = vst [vmem:[#allocation16 + $0x40] sm:$0xff] %v2118_v26   ;;  %1374 = vmatmul.bf16.gmra.mxu2 %v1198_v22 }
 0x150   :  { %v954_v27 = vpop.f32.mrf.mxu3 }
 0x151   :  { %v955_v47 = vadd.f32 %v2747_v9, %v954_v27 }
 0x152   :  { %v1335_v29 = vpop.f32.mrf.mxu2  ;;  %v351_v30 = vpop.f32.mrf.mxu0 }
 0x153   :  { %v352_v31 = vadd.f32 %v2742_v7, %v351_v30  ;;  %v876_v23 = vpop.f32.mrf.mxu1  ;;  %v1336_v52 = vadd.f32 %v2755_v16, %v1335_v29  ;;  %v739_v29 = vpack.c.bf16 %v695_v18, %v694_v12  ;;  %v1200_v30 = vpack.c.bf16 %v1156_v19, %v1155_v14  ;;  %v174_v18 = vld [vmem:[#allocation2 + $0x158] sm:$0xff]  ;;  %v698_v19 = vld [vmem:[#allocation5 + $0x150] sm:$0xff] }
 0x154   :  { %v877_v33 = vadd.f32 %v2747_v9, %v876_v23 }
 0x155   :  { %v483_v35 = vmul.f32 0.088388346, %v352_v31 }
 0x156   :  { %v1963_v38 = vpack.c.bf16 %v877_v33, %v875_v32 }
 0x157   :  { %v1803_v42 = vpack.c.bf16 %v483_v35, %v482_v34 }
 0x158   :  { %2274 = vst [vmem:[#allocation14 + $0x48] sm:$0xff] %v1963_v38   ;;  %v956_v46 = vpop.f32.mrf.mxu3 }
 0x159   :  { %2243 = vst [vmem:[#allocation13 + $0x48] sm:$0xff] %v1803_v42   ;;  %v957_v48 = vadd.f32 %v2747_v9, %v956_v46  ;;  %v696_v46 = vld [vmem:[#allocation5 + $0x140] sm:$0xff] }
 0x15a   :  { %v1337_v49 = vpop.f32.mrf.mxu2  ;;  %v354_v54 = vpop.f32.mrf.mxu0 }
 0x15b   :  { %v1338_v53 = vadd.f32 %v2755_v16, %v1337_v49  ;;  %v2043_v57 = vpack.c.bf16 %v957_v48, %v955_v47  ;;  %v879_v58 = vpop.f32.mrf.mxu1  ;;  %v355_v61 = vadd.f32 %v2742_v7, %v354_v54  ;;  %v1173_v47 = vld [vmem:[#allocation7 + $0x1c0] sm:$0xff]  ;;  %v1174_v48 = vld [vmem:[#allocation7 + $0x1c8] sm:$0xff] }
 0x15c   :  { %v880_v3 = vadd.f32 %v2747_v9, %v879_v58 }
 0x15d   :  { %v2123_v59 = vpack.c.bf16 %v1338_v53, %v1336_v52  ;;  %2290 = vst [vmem:[#allocation14 + $0xc8] sm:$0xff] %v2043_v57   ;;  %393 = vmatmul.bf16.gmra.mxu0 %v213_v50  ;;  %1419 = vmatmul.bf16.gmra.mxu3 %v1207_v51  ;;  %v484_v2 = vmul.f32 0.088388346, %v355_v61  ;;  %v697_v50 = vld [vmem:[#allocation5 + $0x148] sm:$0xff]  ;;  %v1157_v51 = vld [vmem:[#allocation7 + $0x140] sm:$0xff]  ;;  %v1209_v57 = vpack.c.bf16 %v1174_v48, %v1173_v47 }
 0x15e   :  { %918 = vmatmul.bf16.gmra.mxu1 %v738_v55  ;;  %v1158_v52 = vld [vmem:[#allocation7 + $0x148] sm:$0xff]  ;;  %v740_v61 = vpack.c.bf16 %v697_v50, %v696_v46  ;;  %v175_v50 = vld [vmem:[#allocation2 + $0x160] sm:$0xff] }
 0x15f   :  { %2305 = vst [vmem:[#allocation16 + $0x48] sm:$0xff] %v2123_v59   ;;  %1379 = vmatmul.bf16.gmra.mxu2 %v1199_v56  ;;  %v215_v56 = vpack.c.bf16 %v172_v44, %v171_v43 }
 0x160   :  { %v959_v60 = vpop.f32.mrf.mxu3 }
 0x161   :  { %v960_v17 = vadd.f32 %v2747_v9, %v959_v60 }
 0x162   :  { %v1340_v62 = vpop.f32.mrf.mxu2  ;;  %v356_v63 = vpop.f32.mrf.mxu0 }
 0x163   :  { %v357_v0 = vadd.f32 %v2742_v7, %v356_v63  ;;  %v881_v1 = vpop.f32.mrf.mxu1  ;;  %v1341_v26 = vadd.f32 %v2755_v16, %v1340_v62  ;;  %v1201_v62 = vpack.c.bf16 %v1158_v52, %v1157_v51  ;;  %v176_v51 = vld [vmem:[#allocation2 + $0x168] sm:$0xff] }
 0x164   :  { %v882_v4 = vadd.f32 %v2747_v9, %v881_v1 }
 0x165   :  { %v485_v6 = vmul.f32 0.088388346, %v357_v0 }
 0x166   :  { %v1968_v10 = vpack.c.bf16 %v882_v4, %v880_v3  ;;  %v2853_v3 = vld [vmem:[%s2985_s6] ss:$0 sm:$0xff] }
 0x167   :  { %v1808_v15 = vpack.c.bf16 %v485_v6, %v484_v2 }
 0x168   :  { %2275 = vst [vmem:[#allocation14 + $0x50] sm:$0xff] %v1968_v10   ;;  %v961_v21 = vpop.f32.mrf.mxu3 }
 0x169   :  { %2244 = vst [vmem:[#allocation13 + $0x50] sm:$0xff] %v1808_v15   ;;  %v962_v20 = vadd.f32 %v2747_v9, %v961_v21  ;;  %v173_v15 = vld [vmem:[#allocation2 + $0x150] sm:$0xff] }
 0x16a   :  { %v1342_v22 = vpop.f32.mrf.mxu2  ;;  %v359_v28 = vpop.f32.mrf.mxu0  ;;  %v1175_v21 = vld [vmem:[#allocation7 + $0x1d0] sm:$0xff] }
 0x16b   :  { %v1343_v27 = vadd.f32 %v2755_v16, %v1342_v22  ;;  %v2048_v31 = vpack.c.bf16 %v962_v20, %v960_v17  ;;  %v884_v23 = vpop.f32.mrf.mxu1  ;;  %v360_v34 = vadd.f32 %v2742_v7, %v359_v28  ;;  %v1176_v17 = vld [vmem:[#allocation7 + $0x1d8] sm:$0xff] }
 0x16c   :  { %v885_v39 = vadd.f32 %v2747_v9, %v884_v23  ;;  %v699_v22 = vld [vmem:[#allocation5 + $0x158] sm:$0xff]  ;;  %v2869_v23 = vld [vmem:[%s2987_s8] ss:$0 sm:$0xff]  ;;  %s2609_s8 = smov [#allocation14]  }
 0x16d   :  { %v2128_v32 = vpack.c.bf16 %v1343_v27, %v1341_v26  ;;  %2291 = vst [vmem:[#allocation14 + $0xd0] sm:$0xff] %v2048_v31   ;;  %398 = vmatmul.bf16.gmra.mxu0 %v214_v24  ;;  %1424 = vmatmul.bf16.gmra.mxu3 %v1208_v25  ;;  %v486_v41 = vmul.f32 0.088388346, %v360_v34  ;;  %v1159_v24 = vld [vmem:[#allocation7 + $0x150] sm:$0xff]  ;;  %v1160_v25 = vld [vmem:[#allocation7 + $0x158] sm:$0xff]  ;;  %v1210_v31 = vpack.c.bf16 %v1176_v17, %v1175_v21  ;;  %s1595_s17 = sshll.u32 %s2609_s8, 4  ;;  %s1596_s17 = int_to_ptr.vmem [resolvable:$true] %s1595_s17 }
 0x16e   :  { %923 = vmatmul.bf16.gmra.mxu1 %v739_v29 }
 0x16f   :  { %2306 = vst [vmem:[#allocation16 + $0x50] sm:$0xff] %v2128_v32   ;;  %1384 = vmatmul.bf16.gmra.mxu2 %v1200_v30  ;;  %v216_v30 = vpack.c.bf16 %v174_v18, %v173_v15 }
 0x170   :  { %v964_v33 = vpop.f32.mrf.mxu3 }
 0x172   :  { %v1345_v35 = vpop.f32.mrf.mxu2  ;;  %v361_v36 = vpop.f32.mrf.mxu0 }
 0x173   :  { %v362_v37 = vadd.f32 %v2742_v7, %v361_v36  ;;  %v886_v38 = vpop.f32.mrf.mxu1  ;;  %v965_v7 = vadd.f32 %v2747_v9, %v964_v33  ;;  %v1346_v58 = vadd.f32 %v2755_v16, %v1345_v35  ;;  %v741_v35 = vpack.c.bf16 %v699_v22, %v698_v19  ;;  %v177_v22 = vld [vmem:[#allocation2 + $0x170] sm:$0xff] }
 0x174   :  { %v887_v40 = vadd.f32 %v2747_v9, %v886_v38  ;;  %v1202_v36 = vpack.c.bf16 %v1160_v25, %v1159_v24  ;;  %v178_v24 = vld [vmem:[#allocation2 + $0x178] sm:$0xff] }
 0x175   :  { %v487_v42 = vmul.f32 0.088388346, %v362_v37 }
 0x176   :  { %v1973_v45 = vpack.c.bf16 %v887_v40, %v885_v39 }
 0x177   :  { %v1813_v49 = vpack.c.bf16 %v487_v42, %v486_v41 }
 0x178   :  { %2276 = vst [vmem:[#allocation14 + $0x58] sm:$0xff] %v1973_v45   ;;  %v966_v53 = vpop.f32.mrf.mxu3 }
 0x179   :  { %2245 = vst [vmem:[#allocation13 + $0x58] sm:$0xff] %v1813_v49   ;;  %v967_v54 = vadd.f32 %v2747_v9, %v966_v53  ;;  %v700_v53 = vld [vmem:[#allocation5 + $0x160] sm:$0xff] }
 0x17a   :  { %v1347_v55 = vpop.f32.mrf.mxu2  ;;  %v364_v60 = vpop.f32.mrf.mxu0 }
 0x17b   :  { %v1348_v59 = vadd.f32 %v2755_v16, %v1347_v55  ;;  %v2053_v63 = vpack.c.bf16 %v967_v54, %v965_v7  ;;  %v889_v0 = vpop.f32.mrf.mxu1  ;;  %v365_v16 = vadd.f32 %v2853_v3, %v364_v60  ;;  %v1177_v7 = vld [vmem:[#allocation7 + $0x1e0] sm:$0xff]  ;;  %v1178_v54 = vld [vmem:[#allocation7 + $0x1e8] sm:$0xff] }
 0x17c   :  { %v890_v10 = vadd.f32 %v2860_v8, %v889_v0  ;;  %v1211_v0 = vpack.c.bf16 %v1178_v54, %v1177_v7 }
 0x17d   :  { %v2133_v1 = vpack.c.bf16 %v1348_v59, %v1346_v58  ;;  %2292 = vst [vmem:[#allocation14 + $0xd8] sm:$0xff] %v2053_v63   ;;  %403 = vmatmul.bf16.gmra.mxu0 %v215_v56  ;;  %1429 = vmatmul.bf16.gmra.mxu3 %v1209_v57  ;;  %v488_v13 = vmul.f32 0.088388346, %v365_v16  ;;  %v701_v56 = vld [vmem:[#allocation5 + $0x168] sm:$0xff]  ;;  %v1161_v57 = vld [vmem:[#allocation7 + $0x160] sm:$0xff]  ;;  %v217_v63 = vpack.c.bf16 %v176_v51, %v175_v50 }
 0x17e   :  { %928 = vmatmul.bf16.gmra.mxu1 %v740_v61  ;;  %v1162_v58 = vld [vmem:[#allocation7 + $0x168] sm:$0xff] }
 0x17f   :  { %2307 = vst [vmem:[#allocation16 + $0x58] sm:$0xff] %v2133_v1   ;;  %1389 = vmatmul.bf16.gmra.mxu2 %v1201_v62 }
 0x180   :  { %v969_v9 = vpop.f32.mrf.mxu3 }
 0x181   :  { %v970_v27 = vadd.f32 %v2860_v8, %v969_v9 }
 0x182   :  { %v1350_v4 = vpop.f32.mrf.mxu2  ;;  %v366_v2 = vpop.f32.mrf.mxu0 }
 0x183   :  { %v367_v6 = vadd.f32 %v2853_v3, %v366_v2  ;;  %v891_v5 = vpop.f32.mrf.mxu1  ;;  %v1351_v32 = vadd.f32 %v2869_v23, %v1350_v4  ;;  %v742_v4 = vpack.c.bf16 %v701_v56, %v700_v53  ;;  %v1203_v2 = vpack.c.bf16 %v1162_v58, %v1161_v57 }
 0x184   :  { %v892_v12 = vadd.f32 %v2860_v8, %v891_v5 }
 0x185   :  { %v489_v11 = vmul.f32 0.088388346, %v367_v6 }
 0x186   :  { %v1978_v14 = vpack.c.bf16 %v892_v12, %v890_v10 }
 0x187   :  { %v1818_v20 = vpack.c.bf16 %v489_v11, %v488_v13 }
 0x188   :  { %2277 = vst [vmem:[#allocation14 + $0x60] sm:$0xff] %v1978_v14   ;;  %v971_v26 = vpop.f32.mrf.mxu3 }
 0x189   :  { %2246 = vst [vmem:[#allocation13 + $0x60] sm:$0xff] %v1818_v20   ;;  %v972_v28 = vadd.f32 %v2860_v8, %v971_v26  ;;  %v702_v26 = vld [vmem:[#allocation5 + $0x170] sm:$0xff] }
 0x18a   :  { %v1352_v29 = vpop.f32.mrf.mxu2  ;;  %v369_v34 = vpop.f32.mrf.mxu0 }
 0x18b   :  { %v1353_v33 = vadd.f32 %v2869_v23, %v1352_v29  ;;  %v2058_v37 = vpack.c.bf16 %v972_v28, %v970_v27  ;;  %v894_v38 = vpop.f32.mrf.mxu1  ;;  %v370_v41 = vadd.f32 %v2853_v3, %v369_v34  ;;  %v1179_v27 = vld [vmem:[#allocation7 + $0x1f0] sm:$0xff]  ;;  %v1180_v28 = vld [vmem:[#allocation7 + $0x1f8] sm:$0xff] }
 0x18c   :  { %v895_v46 = vadd.f32 %v2860_v8, %v894_v38  ;;  %v1212_v38 = vpack.c.bf16 %v1180_v28, %v1179_v27 }
 0x18d   :  { %v2138_v39 = vpack.c.bf16 %v1353_v33, %v1351_v32  ;;  %2293 = vst [vmem:[#allocation14 + $0xe0] sm:$0xff] %v2058_v37   ;;  %408 = vmatmul.bf16.gmra.mxu0 %v216_v30  ;;  %1434 = vmatmul.bf16.gmra.mxu3 %v1210_v31  ;;  %v490_v48 = vmul.f32 0.088388346, %v370_v41  ;;  %v703_v30 = vld [vmem:[#allocation5 + $0x178] sm:$0xff]  ;;  %v1163_v31 = vld [vmem:[#allocation7 + $0x170] sm:$0xff]  ;;  %v218_v37 = vpack.c.bf16 %v178_v24, %v177_v22 }
 0x18e   :  { %933 = vmatmul.bf16.gmra.mxu1 %v741_v35  ;;  %v1164_v32 = vld [vmem:[#allocation7 + $0x178] sm:$0xff] }
 0x18f   :  { %2308 = vst [vmem:[#allocation16 + $0x60] sm:$0xff] %v2138_v39   ;;  %1394 = vmatmul.bf16.gmra.mxu2 %v1202_v36 }
 0x190   :  { %v974_v40 = vpop.f32.mrf.mxu3 }
 0x191   :  { %v975_v60 = vadd.f32 %v2860_v8, %v974_v40 }
 0x192   :  { %v1355_v42 = vpop.f32.mrf.mxu2  ;;  %v371_v43 = vpop.f32.mrf.mxu0 }
 0x193   :  { %v372_v44 = vadd.f32 %v2853_v3, %v371_v43  ;;  %v896_v45 = vpop.f32.mrf.mxu1  ;;  %v1356_v1 = vadd.f32 %v2869_v23, %v1355_v42  ;;  %v743_v42 = vpack.c.bf16 %v703_v30, %v702_v26  ;;  %v1204_v43 = vpack.c.bf16 %v1164_v32, %v1163_v31 }
 0x194   :  { %v897_v47 = vadd.f32 %v2860_v8, %v896_v45 }
 0x195   :  { %v491_v49 = vmul.f32 0.088388346, %v372_v44 }
 0x196   :  { %v1983_v52 = vpack.c.bf16 %v897_v47, %v895_v46 }
 0x197   :  { %v1823_v55 = vpack.c.bf16 %v491_v49, %v490_v48 }
 0x198   :  { %2278 = vst [vmem:[#allocation14 + $0x68] sm:$0xff] %v1983_v52   ;;  %v976_v59 = vpop.f32.mrf.mxu3 }
 0x199   :  { %2247 = vst [vmem:[#allocation13 + $0x68] sm:$0xff] %v1823_v55   ;;  %v977_v61 = vadd.f32 %v2860_v8, %v976_v59 }
 0x19a   :  { %v1357_v62 = vpop.f32.mrf.mxu2  ;;  %v374_v16 = vpop.f32.mrf.mxu0 }
 0x19b   :  { %v1358_v9 = vadd.f32 %v2869_v23, %v1357_v62  ;;  %v2063_v6 = vpack.c.bf16 %v977_v61, %v975_v60  ;;  %v899_v5 = vpop.f32.mrf.mxu1  ;;  %v375_v13 = vadd.f32 %v2853_v3, %v374_v16 }
 0x19c   :  { %v900_v19 = vadd.f32 %v2860_v8, %v899_v5 }
 0x19d   :  { %v2143_v10 = vpack.c.bf16 %v1358_v9, %v1356_v1  ;;  %2294 = vst [vmem:[#allocation14 + $0xe8] sm:$0xff] %v2063_v6   ;;  %413 = vmatmul.bf16.gmra.mxu0 %v217_v63  ;;  %1439 = vmatmul.bf16.gmra.mxu3 %v1211_v0  ;;  %v492_v17 = vmul.f32 0.088388346, %v375_v13 }
 0x19e   :  { %938 = vmatmul.bf16.gmra.mxu1 %v742_v4 }
 0x19f   :  { %2309 = vst [vmem:[#allocation16 + $0x68] sm:$0xff] %v2143_v10   ;;  %1399 = vmatmul.bf16.gmra.mxu2 %v1203_v2 }
 0x1a0   :  { %v979_v12 = vpop.f32.mrf.mxu3 }
 0x1a1   :  { %v980_v34 = vadd.f32 %v2860_v8, %v979_v12 }
 0x1a2   :  { %v1360_v11 = vpop.f32.mrf.mxu2  ;;  %v376_v15 = vpop.f32.mrf.mxu0 }
 0x1a3   :  { %v377_v18 = vadd.f32 %v2853_v3, %v376_v15  ;;  %v901_v14 = vpop.f32.mrf.mxu1  ;;  %v1361_v39 = vadd.f32 %v2869_v23, %v1360_v11 }
 0x1a4   :  { %v902_v21 = vadd.f32 %v2860_v8, %v901_v14 }
 0x1a5   :  { %v493_v20 = vmul.f32 0.088388346, %v377_v18 }
 0x1a6   :  { %v1988_v25 = vpack.c.bf16 %v902_v21, %v900_v19 }
 0x1a7   :  { %v1828_v29 = vpack.c.bf16 %v493_v20, %v492_v17 }
 0x1a8   :  { %2279 = vst [vmem:[#allocation14 + $0x70] sm:$0xff] %v1988_v25   ;;  %v981_v33 = vpop.f32.mrf.mxu3 }
 0x1a9   :  { %2248 = vst [vmem:[#allocation13 + $0x70] sm:$0xff] %v1828_v29   ;;  %v982_v35 = vadd.f32 %v2860_v8, %v981_v33 }
 0x1aa   :  { %v1362_v36 = vpop.f32.mrf.mxu2  ;;  %v379_v41 = vpop.f32.mrf.mxu0 }
 0x1ab   :  { %v1363_v40 = vadd.f32 %v2869_v23, %v1362_v36  ;;  %v2068_v44 = vpack.c.bf16 %v982_v35, %v980_v34  ;;  %v904_v45 = vpop.f32.mrf.mxu1  ;;  %v380_v48 = vadd.f32 %v2853_v3, %v379_v41 }
 0x1ac   :  { %v905_v53 = vadd.f32 %v2860_v8, %v904_v45 }
 0x1ad   :  { %v2148_v46 = vpack.c.bf16 %v1363_v40, %v1361_v39  ;;  %2295 = vst [vmem:[#allocation14 + $0xf0] sm:$0xff] %v2068_v44   ;;  %418 = vmatmul.bf16.gmra.mxu0 %v218_v37  ;;  %1444 = vmatmul.bf16.gmra.mxu3 %v1212_v38  ;;  %v494_v54 = vmul.f32 0.088388346, %v380_v48 }
 0x1ae   :  { %943 = vmatmul.bf16.gmra.mxu1 %v743_v42 }
 0x1af   :  { %2310 = vst [vmem:[#allocation16 + $0x70] sm:$0xff] %v2148_v46   ;;  %1404 = vmatmul.bf16.gmra.mxu2 %v1204_v43 }
 0x1b0   :  { %v984_v47 = vpop.f32.mrf.mxu3 }
 0x1b1   :  { %v985_v59 = vadd.f32 %v2860_v8, %v984_v47 }
 0x1b2   :  { %v1365_v49 = vpop.f32.mrf.mxu2  ;;  %v381_v50 = vpop.f32.mrf.mxu0 }
 0x1b3   :  { %v382_v51 = vadd.f32 %v2853_v3, %v381_v50  ;;  %v906_v52 = vpop.f32.mrf.mxu1  ;;  %v1366_v62 = vadd.f32 %v2869_v23, %v1365_v49 }
 0x1b4   :  { %v907_v7 = vadd.f32 %v2860_v8, %v906_v52 }
 0x1b5   :  { %v495_v55 = vmul.f32 0.088388346, %v382_v51 }
 0x1b6   :  { %v1993_v56 = vpack.c.bf16 %v907_v7, %v905_v53 }
 0x1b7   :  { %v1833_v57 = vpack.c.bf16 %v495_v55, %v494_v54 }
 0x1b8   :  { %2280 = vst [vmem:[#allocation14 + $0x78] sm:$0xff] %v1993_v56   ;;  %v986_v58 = vpop.f32.mrf.mxu3 }
 0x1b9   :  { %2249 = vst [vmem:[#allocation13 + $0x78] sm:$0xff] %v1833_v57   ;;  %v987_v60 = vadd.f32 %v2860_v8, %v986_v58 }
 0x1ba   :  { %v1367_v61 = vpop.f32.mrf.mxu2  ;;  %v384_v0 = vpop.f32.mrf.mxu0 }
 0x1bb   :  { %v1368_v63 = vadd.f32 %v2869_v23, %v1367_v61  ;;  %v2073_v1 = vpack.c.bf16 %v987_v60, %v985_v59  ;;  %v909_v9 = vpop.f32.mrf.mxu1  ;;  %v385_v2 = vadd.f32 %v2853_v3, %v384_v0 }
 0x1bc   :  { %v910_v13 = vadd.f32 %v2860_v8, %v909_v9 }
 0x1bd   :  { %v2153_v16 = vpack.c.bf16 %v1368_v63, %v1366_v62  ;;  %2296 = vst [vmem:[#allocation14 + $0xf8] sm:$0xff] %v2073_v1   ;;  %v496_v15 = vmul.f32 0.088388346, %v385_v2 }
 0x1bf   :  { %2311 = vst [vmem:[#allocation16 + $0x78] sm:$0xff] %v2153_v16  }
 0x1c0   :  { %v1410_v4 = vpop.f32.mrf.mxu3 }
 0x1c1   :  { %v1411_v17 = vadd.f32 %v2869_v23, %v1410_v4 }
 0x1c2   :  { %v1370_v6 = vpop.f32.mrf.mxu2  ;;  %v386_v5 = vpop.f32.mrf.mxu0 }
 0x1c3   :  { %v387_v10 = vadd.f32 %v2853_v3, %v386_v5  ;;  %v911_v12 = vpop.f32.mrf.mxu1  ;;  %v1371_v24 = vadd.f32 %v2869_v23, %v1370_v6 }
 0x1c4   :  { %v912_v11 = vadd.f32 %v2860_v8, %v911_v12 }
 0x1c5   :  { %v497_v18 = vmul.f32 0.088388346, %v387_v10 }
 0x1c6   :  { %v1998_v14 = vpack.c.bf16 %v912_v11, %v910_v13 }
 0x1c7   :  { %v1838_v19 = vpack.c.bf16 %v497_v18, %v496_v15 }
 0x1c8   :  { %2281 = vst [vmem:[#allocation14 + $0x80] sm:$0xff] %v1998_v14   ;;  %v1412_v21 = vpop.f32.mrf.mxu3 }
 0x1c9   :  { %2250 = vst [vmem:[#allocation13 + $0x80] sm:$0xff] %v1838_v19   ;;  %v1413_v22 = vadd.f32 %v2869_v23, %v1412_v21 }
 0x1ca   :  { %v1372_v20 = vpop.f32.mrf.mxu2  ;;  %v389_v26 = vpop.f32.mrf.mxu0 }
 0x1cb   :  { %v1373_v25 = vadd.f32 %v2869_v23, %v1372_v20  ;;  %v2198_v27 = vpack.c.bf16 %v1413_v22, %v1411_v17  ;;  %v914_v28 = vpop.f32.mrf.mxu1  ;;  %v390_v31 = vadd.f32 %v2853_v3, %v389_v26 }
 0x1cc   :  { %v915_v36 = vadd.f32 %v2860_v8, %v914_v28 }
 0x1cd   :  { %v2158_v29 = vpack.c.bf16 %v1373_v25, %v1371_v24  ;;  %2320 = vst [vmem:[#allocation16 + $0xc0] sm:$0xff] %v2198_v27   ;;  %v498_v38 = vmul.f32 0.088388346, %v390_v31 }
 0x1cf   :  { %2312 = vst [vmem:[#allocation16 + $0x80] sm:$0xff] %v2158_v29  }
 0x1d0   :  { %v1415_v30 = vpop.f32.mrf.mxu3 }
 0x1d1   :  { %v1416_v43 = vadd.f32 %v2869_v23, %v1415_v30 }
 0x1d2   :  { %v1375_v32 = vpop.f32.mrf.mxu2  ;;  %v391_v33 = vpop.f32.mrf.mxu0 }
 0x1d3   :  { %v392_v34 = vadd.f32 %v2853_v3, %v391_v33  ;;  %v916_v35 = vpop.f32.mrf.mxu1  ;;  %v1376_v46 = vadd.f32 %v2869_v23, %v1375_v32 }
 0x1d4   :  { %v917_v37 = vadd.f32 %v2860_v8, %v916_v35 }
 0x1d5   :  { %v499_v39 = vmul.f32 0.088388346, %v392_v34 }
 0x1d6   :  { %v2003_v40 = vpack.c.bf16 %v917_v37, %v915_v36 }
 0x1d7   :  { %v1843_v41 = vpack.c.bf16 %v499_v39, %v498_v38 }
 0x1d8   :  { %2282 = vst [vmem:[#allocation14 + $0x88] sm:$0xff] %v2003_v40   ;;  %v1417_v42 = vpop.f32.mrf.mxu3 }
 0x1d9   :  { %2251 = vst [vmem:[#allocation13 + $0x88] sm:$0xff] %v1843_v41   ;;  %v1418_v45 = vadd.f32 %v2869_v23, %v1417_v42 }
 0x1da   :  { %v1377_v44 = vpop.f32.mrf.mxu2  ;;  %v394_v48 = vpop.f32.mrf.mxu0 }
 0x1db   :  { %v1378_v47 = vadd.f32 %v2869_v23, %v1377_v44  ;;  %v2203_v49 = vpack.c.bf16 %v1418_v45, %v1416_v43  ;;  %v919_v50 = vpop.f32.mrf.mxu1  ;;  %v395_v53 = vadd.f32 %v2853_v3, %v394_v48 }
 0x1dc   :  { %v920_v57 = vadd.f32 %v2860_v8, %v919_v50 }
 0x1dd   :  { %v2163_v51 = vpack.c.bf16 %v1378_v47, %v1376_v46  ;;  %2321 = vst [vmem:[#allocation16 + $0xc8] sm:$0xff] %v2203_v49   ;;  %v500_v59 = vmul.f32 0.088388346, %v395_v53 }
 0x1df   :  { %2313 = vst [vmem:[#allocation16 + $0x88] sm:$0xff] %v2163_v51  }
 0x1e0   :  { %v1420_v52 = vpop.f32.mrf.mxu3 }
 0x1e1   :  { %v1421_v0 = vadd.f32 %v2869_v23, %v1420_v52 }
 0x1e2   :  { %v1380_v7 = vpop.f32.mrf.mxu2  ;;  %v396_v54 = vpop.f32.mrf.mxu0 }
 0x1e3   :  { %v397_v55 = vadd.f32 %v2853_v3, %v396_v54  ;;  %v921_v56 = vpop.f32.mrf.mxu1  ;;  %v1381_v16 = vadd.f32 %v2869_v23, %v1380_v7 }
 0x1e4   :  { %v922_v58 = vadd.f32 %v2860_v8, %v921_v56 }
 0x1e5   :  { %v501_v60 = vmul.f32 0.088388346, %v397_v55 }
 0x1e6   :  { %v2008_v61 = vpack.c.bf16 %v922_v58, %v920_v57 }
 0x1e7   :  { %v1848_v62 = vpack.c.bf16 %v501_v60, %v500_v59 }
 0x1e8   :  { %2283 = vst [vmem:[#allocation14 + $0x90] sm:$0xff] %v2008_v61   ;;  %v1422_v63 = vpop.f32.mrf.mxu3 }
 0x1e9   :  { %2252 = vst [vmem:[#allocation13 + $0x90] sm:$0xff] %v1848_v62   ;;  %v1423_v9 = vadd.f32 %v2869_v23, %v1422_v63 }
 0x1ea   :  { %v1382_v1 = vpop.f32.mrf.mxu2  ;;  %v399_v2 = vpop.f32.mrf.mxu0 }
 0x1eb   :  { %v1383_v4 = vadd.f32 %v2869_v23, %v1382_v1  ;;  %v2208_v6 = vpack.c.bf16 %v1423_v9, %v1421_v0  ;;  %v924_v5 = vpop.f32.mrf.mxu1  ;;  %v400_v13 = vadd.f32 %v2853_v3, %v399_v2 }
 0x1ec   :  { %v925_v19 = vadd.f32 %v2860_v8, %v924_v5 }
 0x1ed   :  { %v2168_v10 = vpack.c.bf16 %v1383_v4, %v1381_v16  ;;  %2322 = vst [vmem:[#allocation16 + $0xd0] sm:$0xff] %v2208_v6   ;;  %v502_v17 = vmul.f32 0.088388346, %v400_v13 }
 0x1ef   :  { %2314 = vst [vmem:[#allocation16 + $0x90] sm:$0xff] %v2168_v10  }
 0x1f0   :  { %v1425_v12 = vpop.f32.mrf.mxu3 }
 0x1f1   :  { %v1426_v26 = vadd.f32 %v2869_v23, %v1425_v12 }
 0x1f2   :  { %v1385_v11 = vpop.f32.mrf.mxu2  ;;  %v401_v15 = vpop.f32.mrf.mxu0 }
 0x1f3   :  { %v402_v18 = vadd.f32 %v2853_v3, %v401_v15  ;;  %v926_v14 = vpop.f32.mrf.mxu1  ;;  %v1386_v29 = vadd.f32 %v2869_v23, %v1385_v11 }
 0x1f4   :  { %v927_v21 = vadd.f32 %v2860_v8, %v926_v14 }
 0x1f5   :  { %v503_v20 = vmul.f32 0.088388346, %v402_v18 }
 0x1f6   :  { %v2013_v22 = vpack.c.bf16 %v927_v21, %v925_v19 }
 0x1f7   :  { %v1853_v24 = vpack.c.bf16 %v503_v20, %v502_v17 }
 0x1f8   :  { %2284 = vst [vmem:[#allocation14 + $0x98] sm:$0xff] %v2013_v22   ;;  %v1427_v25 = vpop.f32.mrf.mxu3 }
 0x1f9   :  { %2253 = vst [vmem:[#allocation13 + $0x98] sm:$0xff] %v1853_v24   ;;  %v1428_v28 = vadd.f32 %v2869_v23, %v1427_v25 }
 0x1fa   :  { %v1387_v27 = vpop.f32.mrf.mxu2  ;;  %v404_v31 = vpop.f32.mrf.mxu0 }
 0x1fb   :  { %v1388_v30 = vadd.f32 %v2869_v23, %v1387_v27  ;;  %v2213_v32 = vpack.c.bf16 %v1428_v28, %v1426_v26  ;;  %v929_v33 = vpop.f32.mrf.mxu1  ;;  %v405_v36 = vadd.f32 %v2853_v3, %v404_v31 }
 0x1fc   :  { %v930_v41 = vadd.f32 %v2860_v8, %v929_v33 }
 0x1fd   :  { %v2173_v34 = vpack.c.bf16 %v1388_v30, %v1386_v29  ;;  %2323 = vst [vmem:[#allocation16 + $0xd8] sm:$0xff] %v2213_v32   ;;  %v504_v43 = vmul.f32 0.088388346, %v405_v36 }
 0x1ff   :  { %2315 = vst [vmem:[#allocation16 + $0x98] sm:$0xff] %v2173_v34  }
 0x200   :  { %v1430_v35 = vpop.f32.mrf.mxu3 }
 0x201   :  { %v1431_v48 = vadd.f32 %v2869_v23, %v1430_v35 }
 0x202   :  { %v1390_v37 = vpop.f32.mrf.mxu2  ;;  %v406_v38 = vpop.f32.mrf.mxu0 }
 0x203   :  { %v407_v39 = vadd.f32 %v2853_v3, %v406_v38  ;;  %v931_v40 = vpop.f32.mrf.mxu1  ;;  %v1391_v51 = vadd.f32 %v2869_v23, %v1390_v37 }
 0x204   :  { %v932_v42 = vadd.f32 %v2860_v8, %v931_v40 }
 0x205   :  { %v505_v44 = vmul.f32 0.088388346, %v407_v39 }
 0x206   :  { %v2018_v45 = vpack.c.bf16 %v932_v42, %v930_v41 }
 0x207   :  { %v1858_v46 = vpack.c.bf16 %v505_v44, %v504_v43 }
 0x208   :  { %2285 = vst [vmem:[#allocation14 + $0xa0] sm:$0xff] %v2018_v45   ;;  %v1432_v47 = vpop.f32.mrf.mxu3 }
 0x209   :  { %2254 = vst [vmem:[#allocation13 + $0xa0] sm:$0xff] %v1858_v46   ;;  %v1433_v50 = vadd.f32 %v2869_v23, %v1432_v47 }
 0x20a   :  { %v1392_v49 = vpop.f32.mrf.mxu2  ;;  %v409_v53 = vpop.f32.mrf.mxu0 }
 0x20b   :  { %v1393_v52 = vadd.f32 %v2869_v23, %v1392_v49  ;;  %v2218_v7 = vpack.c.bf16 %v1433_v50, %v1431_v48  ;;  %v934_v54 = vpop.f32.mrf.mxu1  ;;  %v410_v57 = vadd.f32 %v2853_v3, %v409_v53 }
 0x20c   :  { %v935_v62 = vadd.f32 %v2860_v8, %v934_v54 }
 0x20d   :  { %v2178_v55 = vpack.c.bf16 %v1393_v52, %v1391_v51  ;;  %2324 = vst [vmem:[#allocation16 + $0xe0] sm:$0xff] %v2218_v7   ;;  %v506_v0 = vmul.f32 0.088388346, %v410_v57 }
 0x20f   :  { %2316 = vst [vmem:[#allocation16 + $0xa0] sm:$0xff] %v2178_v55  }
 0x210   :  { %v1435_v56 = vpop.f32.mrf.mxu3 }
 0x211   :  { %v1436_v2 = vadd.f32 %v2869_v23, %v1435_v56 }
 0x212   :  { %v1395_v58 = vpop.f32.mrf.mxu2  ;;  %v411_v59 = vpop.f32.mrf.mxu0 }
 0x213   :  { %v412_v60 = vadd.f32 %v2853_v3, %v411_v59  ;;  %v936_v61 = vpop.f32.mrf.mxu1  ;;  %v1396_v10 = vadd.f32 %v2869_v23, %v1395_v58 }
 0x214   :  { %v937_v63 = vadd.f32 %v2860_v8, %v936_v61 }
 0x215   :  { %v507_v1 = vmul.f32 0.088388346, %v412_v60 }
 0x216   :  { %v2023_v9 = vpack.c.bf16 %v937_v63, %v935_v62 }
 0x217   :  { %v1863_v16 = vpack.c.bf16 %v507_v1, %v506_v0 }
 0x218   :  { %2286 = vst [vmem:[#allocation14 + $0xa8] sm:$0xff] %v2023_v9   ;;  %v1437_v4 = vpop.f32.mrf.mxu3 }
 0x219   :  { %2255 = vst [vmem:[#allocation13 + $0xa8] sm:$0xff] %v1863_v16   ;;  %v1438_v5 = vadd.f32 %v2869_v23, %v1437_v4 }
 0x21a   :  { %v1397_v6 = vpop.f32.mrf.mxu2  ;;  %v414_v13 = vpop.f32.mrf.mxu0 }
 0x21b   :  { %v1398_v12 = vadd.f32 %v2869_v23, %v1397_v6  ;;  %v2223_v11 = vpack.c.bf16 %v1438_v5, %v1436_v2  ;;  %v939_v15 = vpop.f32.mrf.mxu1  ;;  %v415_v19 = vadd.f32 %v2853_v3, %v414_v13 }
 0x21c   :  { %v940_v24 = vadd.f32 %v2860_v8, %v939_v15 }
 0x21d   :  { %v2183_v18 = vpack.c.bf16 %v1398_v12, %v1396_v10  ;;  %2325 = vst [vmem:[#allocation16 + $0xe8] sm:$0xff] %v2223_v11   ;;  %v508_v26 = vmul.f32 0.088388346, %v415_v19 }
 0x21f   :  { %2317 = vst [vmem:[#allocation16 + $0xa8] sm:$0xff] %v2183_v18  }
 0x220   :  { %v1440_v14 = vpop.f32.mrf.mxu3 }
 0x221   :  { %v1441_v31 = vadd.f32 %v2869_v23, %v1440_v14 }
 0x222   :  { %v1400_v21 = vpop.f32.mrf.mxu2  ;;  %v416_v17 = vpop.f32.mrf.mxu0 }
 0x223   :  { %v417_v20 = vadd.f32 %v2853_v3, %v416_v17  ;;  %v941_v22 = vpop.f32.mrf.mxu1  ;;  %v1401_v34 = vadd.f32 %v2869_v23, %v1400_v21 }
 0x224   :  { %v942_v25 = vadd.f32 %v2860_v8, %v941_v22 }
 0x225   :  { %v509_v27 = vmul.f32 0.088388346, %v417_v20 }
 0x226   :  { %v2028_v28 = vpack.c.bf16 %v942_v25, %v940_v24 }
 0x227   :  { %v1868_v29 = vpack.c.bf16 %v509_v27, %v508_v26 }
 0x228   :  { %2287 = vst [vmem:[#allocation14 + $0xb0] sm:$0xff] %v2028_v28   ;;  %v1442_v30 = vpop.f32.mrf.mxu3 }
 0x229   :  { %2256 = vst [vmem:[#allocation13 + $0xb0] sm:$0xff] %v1868_v29   ;;  %v1443_v33 = vadd.f32 %v2869_v23, %v1442_v30 }
 0x22a   :  { %v1402_v32 = vpop.f32.mrf.mxu2  ;;  %v419_v36 = vpop.f32.mrf.mxu0 }
 0x22b   :  { %v1403_v35 = vadd.f32 %v2869_v23, %v1402_v32  ;;  %v2228_v37 = vpack.c.bf16 %v1443_v33, %v1441_v31  ;;  %v944_v38 = vpop.f32.mrf.mxu1  ;;  %v420_v41 = vadd.f32 %v2853_v3, %v419_v36 }
 0x22c   :  { %v945_v46 = vadd.f32 %v2860_v8, %v944_v38 }
 0x22d   :  { %v2188_v39 = vpack.c.bf16 %v1403_v35, %v1401_v34  ;;  %2326 = vst [vmem:[#allocation16 + $0xf0] sm:$0xff] %v2228_v37   ;;  %v510_v48 = vmul.f32 0.088388346, %v420_v41 }
 0x22f   :  { %2318 = vst [vmem:[#allocation16 + $0xb0] sm:$0xff] %v2188_v39  }
 0x230   :  { %v1445_v40 = vpop.f32.mrf.mxu3 }
 0x232   :  { %v1405_v42 = vpop.f32.mrf.mxu2  ;;  %v421_v43 = vpop.f32.mrf.mxu0 }
 0x233   :  { %v422_v44 = vadd.f32 %v2853_v3, %v421_v43  ;;  %v946_v45 = vpop.f32.mrf.mxu1  ;;  %v1406_v7 = vadd.f32 %v2869_v23, %v1405_v42 }
 0x234   :  { %v947_v47 = vadd.f32 %v2860_v8, %v946_v45  ;;  %v1446_v8 = vadd.f32 %v2869_v23, %v1445_v40 }
 0x235   :  { %v511_v49 = vmul.f32 0.088388346, %v422_v44 }
 0x236   :  { %v2033_v3 = vpack.c.bf16 %v947_v47, %v945_v46 }
 0x237   :  { %v1873_v50 = vpack.c.bf16 %v511_v49, %v510_v48 }
 0x238   :  { %2288 = vst [vmem:[#allocation14 + $0xb8] sm:$0xff] %v2033_v3   ;;  %v1447_v51 = vpop.f32.mrf.mxu3 }
 0x239   :  { %2257 = vst [vmem:[#allocation13 + $0xb8] sm:$0xff] %v1873_v50   ;;  %v1448_v53 = vadd.f32 %v2869_v23, %v1447_v51  ;;  %1603 = dma.vmem_to_hbm [thread:$0]  %s1596_s17, 4096, %s1598_s20, [#allocation15], %s2603_s29, %s2603_s29, %s2604_s30  }
 0x23a   :  { %v1407_v52 = vpop.f32.mrf.mxu2  ;;  %1590 = dma.vmem_to_hbm [thread:$0]  %s1583_s22, 4096, %s1585_s24, [#allocation4], %s2603_s29, %s2603_s29, %s2604_s30  }
 0x23b   :  { %v1408_v54 = vadd.f32 %v2869_v23, %v1407_v52  ;;  %v2233_v55 = vpack.c.bf16 %v1448_v53, %v1446_v8 }
 0x23d   :  { %v2193_v56 = vpack.c.bf16 %v1408_v54, %v1406_v7  ;;  %2327 = vst [vmem:[#allocation16 + $0xf8] sm:$0xff] %v2233_v55  }
 0x23f   :  { %2319 = vst [vmem:[#allocation16 + $0xb8] sm:$0xff] %v2193_v56  }
 0x240   :  { %1616 = dma.vmem_to_hbm [thread:$0]  %s1609_s27, 4096, %s1611_s1, [#allocation15], %s2603_s29, %s2603_s29, %s2604_s30  }
 0x241   :  { %2595 = dma.done.wait [#allocation4], 4096  }
 0x242   :  { %2596 = vsyncadd [#allocation4], 4294963200 }
 0x243   :  { %2597 = dma.done.wait [#allocation15], 8192  }
 0x244   :  { %2598 = vsyncadd [#allocation15], 4294959104 }
 0x245   :  { %1629 = vsyncpa [#allocation3], 1 }
 0x246   :  { %1630 = vsyncpa [#allocation6], 1 }
 0x247   :  { %1631 = vsyncpa [#allocation9], 1 }
 0x248   :  { %1632 = vsyncpa [#allocation12], 1 }
 0x249   :  { %1633 = vsyncpa [#allocation4], 1 }
 0x24a   :  { %1634 = vsyncpa [#allocation15], 1 }

</bundles_post_ra>
